<compile_context>
chip_gen: v5e
topology: v5e:2x2
jax: 0.10.0
libtpu: 0.0.40
codegen_flags: <defaults>
</compile_context>

<pallas_src>
import functools

import jax
import jax.numpy as jnp
from jax import lax
from jax.experimental import pallas as pl
from jax.experimental.pallas import tpu as pltpu


def fused_gat_kernel(x_ref, adj_ref,
                     w1_ref, adst1_ref, asrc1_ref, b1_ref,
                     w2_ref, adst2_ref, asrc2_ref, b2_ref,
                     out_ref, h1_ref,
                     *, heads1, c1, c2):
    """Fused GATConv(heads=heads1, concat) -> ReLU -> GATConv(heads=1, mean) -> log_softmax."""
    x = x_ref[...]                       # [N, F_in]
    adj = adj_ref[...]                   # [N, N], adj[i, j] = 1 iff edge j -> i
    # Additive mask for non-edges, computed ONCE and reused for every head and
    # both layers (replaces a per-head compare+select over the [N,N] tile).
    neg = (1.0 - adj) * jnp.float32(-1e30)

    def attn_aggregate(zh, e):
        # e[i, j] = a_dst[i] + a_src[j]  (pre-activation);  zh: [N, C]
        e = jnp.where(e > 0.0, e, 0.2 * e)                     # LeakyReLU(0.2)
        logits = e + neg                                       # mask non-edges
        m = jnp.max(logits, axis=1, keepdims=True)
        p = jnp.exp(logits - m)
        inv = pl.reciprocal(jnp.sum(p, axis=1, keepdims=True), approx=True)
        attn = p * inv                                         # softmax over sources j
        return jnp.dot(attn, zh, preferred_element_type=jnp.float32)

    # ---------------- layer 1: GATConv(F_in, c1, heads=heads1, concat=True) + ReLU --------------
    z1 = jnp.dot(x, w1_ref[...], preferred_element_type=jnp.float32)       # [N, H*C1]
    # Per-node attention scalars for ALL heads at once (block-structured att matrices):
    #   a_dst1[i, h] = <z1_i(head h), att_dst_h>   -> [N, H]   (column form)
    #   a_src1[h, j] = <z1_j(head h), att_src_h>   -> [H, N]   (row form, no transpose needed)
    a_dst1 = jnp.dot(z1, adst1_ref[...], preferred_element_type=jnp.float32)
    a_src1 = lax.dot_general(asrc1_ref[...], z1,
                             dimension_numbers=(((1,), (1,)), ((), ())),
                             preferred_element_type=jnp.float32)
    b1 = b1_ref[...]
    for h in range(heads1):                                    # static unroll (heads1 = 8)
        zh = z1[:, h * c1:(h + 1) * c1]                        # [N, C1]
        e = a_dst1[:, h:h + 1] + a_src1[h:h + 1, :]            # [N, 1] + [1, N] -> [N, N]
        out_h = attn_aggregate(zh, e) + b1[:, h * c1:(h + 1) * c1]
        # concat + ReLU fused: write the head slice straight into the VMEM scratch.
        h1_ref[:, h * c1:(h + 1) * c1] = jnp.maximum(out_h, 0.0)

    # dropout(p=0.0) is an identity.
    # TODO(synk): stochastic dropout (p>0, training) not implemented; module uses p=0.0.

    # ---------------- layer 2: GATConv(H*C1, c2, heads=1, concat=False) + log_softmax -----------
    h1 = h1_ref[...]                                                        # [N, H*C1]
    z2 = jnp.dot(h1, w2_ref[...], preferred_element_type=jnp.float32)       # [N, C2]
    a_dst2 = jnp.dot(z2, adst2_ref[...], preferred_element_type=jnp.float32)  # [N, 1]
    a_src2 = lax.dot_general(asrc2_ref[...], z2,
                             dimension_numbers=(((1,), (1,)), ((), ())),
                             preferred_element_type=jnp.float32)              # [1, N]
    e2 = a_dst2 + a_src2
    o = attn_aggregate(z2, e2) + b2_ref[...]       # heads=1, concat=False -> mean == identity

    # log_softmax over feature dim (dim=1)
    mm = jnp.max(o, axis=1, keepdims=True)
    lse = mm + jnp.log(jnp.sum(jnp.exp(o - mm), axis=1, keepdims=True))
    out_ref[...] = o - lse
    # NOTE: out last dim (num_classes) < 128 -> masked stores; pad/batch the
    # class dim toward a multiple of 128 if this is reused at large N.


def gat_gcn_forward(x, adj, w1, adst1_blk, asrc1_blk, b1,
                    w2, adst2_blk, asrc2_blk, b2, *, heads1, c1, c2):
    n = x.shape[0]
    kernel = functools.partial(fused_gat_kernel, heads1=heads1, c1=c1, c2=c2)
    vmem = pl.BlockSpec(memory_space=pltpu.MemorySpace.VMEM)
    return pl.pallas_call(
        kernel,
        out_shape=jax.ShapeDtypeStruct((n, c2), jnp.float32),
        in_specs=[vmem] * 10,
        out_specs=vmem,
        scratch_shapes=[pltpu.VMEM((n, heads1 * c1), jnp.float32)],   # concat'd h1
    )(x, adj, w1, adst1_blk, asrc1_blk, b1, w2, adst2_blk, asrc2_blk, b2)


def att_block_cols(att):
    """[heads, C] -> [heads*C, heads] with att[h] placed in rows h*C:(h+1)*C of column h."""
    heads, c = att.shape
    eye = jnp.eye(heads, dtype=att.dtype)
    return (att[:, :, None] * eye[:, None, :]).reshape(heads * c, heads)


def glorot(key, shape):
    fan_in, fan_out = shape[-2], shape[-1]
    limit = (6.0 / (fan_in + fan_out)) ** 0.5
    return jax.random.uniform(key, shape, jnp.float32, -limit, limit)


if __name__ == "__main__":
    N, F_IN, NHID, HEADS1, NCLASS = 32, 16, 8, 8, 4

    key = jax.random.PRNGKey(0)
    kx, ke1, ke2, kw1, ka1, kw2, ka2 = jax.random.split(key, 7)

    # node features  (data.x)
    x = jax.random.normal(kx, (N, F_IN), jnp.float32)

    # synthetic edge_index [2, E]: ring + random edges
    ring_src = jnp.arange(N, dtype=jnp.int32)
    ring_dst = jnp.roll(ring_src, -1)
    rand_src = jax.random.randint(ke1, (64,), 0, N, jnp.int32)
    rand_dst = jax.random.randint(ke2, (64,), 0, N, jnp.int32)
    edge_index = jnp.stack([jnp.concatenate([ring_src, rand_src]),
                            jnp.concatenate([ring_dst, rand_dst])])

    # dense adjacency: adj[target, source] = 1, plus self-loops (GATConv default)
    adj = jnp.zeros((N, N), jnp.float32).at[edge_index[1], edge_index[0]].set(1.0)
    adj = adj.at[jnp.arange(N), jnp.arange(N)].set(1.0)

    # ---- gc1 params: GATConv(F_IN, NHID, heads=8, concat=True) ----
    w1 = glorot(kw1, (F_IN, HEADS1 * NHID))
    ka1a, ka1b = jax.random.split(ka1)
    att_src1 = glorot(ka1a, (HEADS1, NHID))
    att_dst1 = glorot(ka1b, (HEADS1, NHID))
    bias1 = jnp.zeros((1, HEADS1 * NHID), jnp.float32)
    adst1_blk = att_block_cols(att_dst1)          # [HEADS1*NHID, HEADS1]
    asrc1_blk = att_block_cols(att_src1).T        # [HEADS1, HEADS1*NHID]

    # ---- gc2 params: GATConv(HEADS1*NHID, NCLASS, heads=1, concat=False) ----
    w2 = glorot(kw2, (HEADS1 * NHID, NCLASS))
    ka2a, ka2b = jax.random.split(ka2)
    att_src2 = glorot(ka2a, (1, NCLASS))
    att_dst2 = glorot(ka2b, (1, NCLASS))
    bias2 = jnp.zeros((1, NCLASS), jnp.float32)
    adst2_blk = att_block_cols(att_dst2)          # [NCLASS, 1]
    asrc2_blk = att_block_cols(att_src2).T        # [1, NCLASS]

    # fused forward: gc1 -> relu -> dropout(p=0 identity) -> gc2 -> log_softmax
    out = gat_gcn_forward(x, adj, w1, adst1_blk, asrc1_blk, bias1,
                          w2, adst2_blk, asrc2_blk, bias2,
                          heads1=HEADS1, c1=NHID, c2=NCLASS)

    out = jax.block_until_ready(out)
    assert out.shape == (N, NCLASS) and out.dtype == jnp.float32
    # rows of log_softmax must exp-sum to 1
    assert bool(jnp.allclose(jnp.sum(jnp.exp(out), axis=1), 1.0, atol=1e-4))
    print("KERNEL_OK")
</pallas_src>

<mosaic_0001>
module attributes {stable_mosaic.version = 11 : i64} {
  func.func @fused_gat_kernel(%arg0: memref<32x16xf32, #tpu.memory_space<vmem>>, %arg1: memref<32x32xf32, #tpu.memory_space<vmem>>, %arg2: memref<16x64xf32, #tpu.memory_space<vmem>>, %arg3: memref<64x8xf32, #tpu.memory_space<vmem>>, %arg4: memref<8x64xf32, #tpu.memory_space<vmem>>, %arg5: memref<1x64xf32, #tpu.memory_space<vmem>>, %arg6: memref<64x4xf32, #tpu.memory_space<vmem>>, %arg7: memref<4x1xf32, #tpu.memory_space<vmem>>, %arg8: memref<1x4xf32, #tpu.memory_space<vmem>>, %arg9: memref<1x4xf32, #tpu.memory_space<vmem>>, %arg10: memref<32x4xf32, #tpu.memory_space<vmem>>, %arg11: memref<32x64xf32, #tpu.memory_space<vmem>>) attributes {dimension_semantics = [], scalar_prefetch = 0 : i64, scratch_operands = 1 : i64, tpu.core_type = #tpu.core_type<tc>} {
    %c0 = arith.constant 0 : index
    %c0_0 = arith.constant 0 : index
    %0 = vector.load %arg0[%c0, %c0_0] : memref<32x16xf32, #tpu.memory_space<vmem>>, vector<32x16xf32>
    %c0_1 = arith.constant 0 : index
    %c0_2 = arith.constant 0 : index
    %1 = vector.load %arg1[%c0_1, %c0_2] : memref<32x32xf32, #tpu.memory_space<vmem>>, vector<32x32xf32>
    %cst = arith.constant 1.000000e+00 : f32
    %2 = vector.broadcast %cst : f32 to vector<32x32xf32>
    %3 = arith.subf %2, %1 : vector<32x32xf32>
    %cst_3 = arith.constant -1.000000e+30 : f32
    %4 = vector.broadcast %cst_3 : f32 to vector<32x32xf32>
    %5 = arith.mulf %3, %4 : vector<32x32xf32>
    %c0_4 = arith.constant 0 : index
    %c0_5 = arith.constant 0 : index
    %6 = vector.load %arg2[%c0_4, %c0_5] : memref<16x64xf32, #tpu.memory_space<vmem>>, vector<16x64xf32>
    %cst_6 = arith.constant dense<0.000000e+00> : vector<32x64xf32>
    %7 = tpu.matmul %0, %6, %cst_6 {dimension_numbers = #tpu.dot_dimension_numbers<[1], [0], [0], [1], [0, 0, 1, 1], [], []>} : vector<32x16xf32>, vector<16x64xf32>, vector<32x64xf32> -> vector<32x64xf32>
    %c0_7 = arith.constant 0 : index
    %c0_8 = arith.constant 0 : index
    %8 = vector.load %arg3[%c0_7, %c0_8] : memref<64x8xf32, #tpu.memory_space<vmem>>, vector<64x8xf32>
    %cst_9 = arith.constant dense<0.000000e+00> : vector<32x8xf32>
    %9 = tpu.matmul %7, %8, %cst_9 {dimension_numbers = #tpu.dot_dimension_numbers<[1], [0], [0], [1], [0, 0, 1, 1], [], []>} : vector<32x64xf32>, vector<64x8xf32>, vector<32x8xf32> -> vector<32x8xf32>
    %c0_10 = arith.constant 0 : index
    %c0_11 = arith.constant 0 : index
    %10 = vector.load %arg4[%c0_10, %c0_11] : memref<8x64xf32, #tpu.memory_space<vmem>>, vector<8x64xf32>
    %cst_12 = arith.constant dense<0.000000e+00> : vector<8x32xf32>
    %11 = tpu.matmul %10, %7, %cst_12 {dimension_numbers = #tpu.dot_dimension_numbers<[1], [1], [0], [0], [0, 0, 1, 0], [], []>} : vector<8x64xf32>, vector<32x64xf32>, vector<8x32xf32> -> vector<8x32xf32>
    %c0_13 = arith.constant 0 : index
    %c0_14 = arith.constant 0 : index
    %12 = vector.load %arg5[%c0_13, %c0_14] : memref<1x64xf32, #tpu.memory_space<vmem>>, vector<1x64xf32>
    %13 = vector.extract_strided_slice %7 {offsets = [0, 0], sizes = [32, 8], strides = [1, 1]} : vector<32x64xf32> to vector<32x8xf32>
    %14 = vector.extract_strided_slice %9 {offsets = [0, 0], sizes = [32, 1], strides = [1, 1]} : vector<32x8xf32> to vector<32x1xf32>
    %15 = vector.extract_strided_slice %11 {offsets = [0, 0], sizes = [1, 32], strides = [1, 1]} : vector<8x32xf32> to vector<1x32xf32>
    %16 = vector.broadcast %14 : vector<32x1xf32> to vector<32x32xf32>
    %17 = vector.broadcast %15 : vector<1x32xf32> to vector<32x32xf32>
    %18 = arith.addf %16, %17 : vector<32x32xf32>
    %cst_15 = arith.constant 0.000000e+00 : f32
    %19 = vector.broadcast %cst_15 : f32 to vector<32x32xf32>
    %20 = arith.cmpf ogt, %18, %19 : vector<32x32xf32>
    %cst_16 = arith.constant 2.000000e-01 : f32
    %21 = vector.broadcast %cst_16 : f32 to vector<32x32xf32>
    %22 = arith.mulf %21, %18 : vector<32x32xf32>
    %23 = arith.select %20, %18, %22 : vector<32x32xi1>, vector<32x32xf32>
    %24 = arith.addf %23, %5 : vector<32x32xf32>
    %cst_17 = arith.constant dense<0xFF800000> : vector<32xf32>
    %25 = vector.multi_reduction <maximumf>, %24, %cst_17 [1] : vector<32x32xf32> to vector<32xf32>
    %26 = vector.shape_cast %25 : vector<32xf32> to vector<32x1xf32>
    %27 = vector.broadcast %26 : vector<32x1xf32> to vector<32x32xf32>
    %28 = arith.subf %24, %27 : vector<32x32xf32>
    %29 = math.exp %28 : vector<32x32xf32>
    %cst_18 = arith.constant dense<0.000000e+00> : vector<32xf32>
    %30 = vector.multi_reduction <add>, %29, %cst_18 [1] : vector<32x32xf32> to vector<32xf32>
    %31 = vector.shape_cast %30 : vector<32xf32> to vector<32x1xf32>
    %32 = tpu.reciprocal %31 {approx = true} : vector<32x1xf32> -> vector<32x1xf32>
    %33 = vector.broadcast %32 : vector<32x1xf32> to vector<32x32xf32>
    %34 = arith.mulf %29, %33 : vector<32x32xf32>
    %cst_19 = arith.constant dense<0.000000e+00> : vector<32x8xf32>
    %35 = tpu.matmul %34, %13, %cst_19 {dimension_numbers = #tpu.dot_dimension_numbers<[1], [0], [0], [1], [0, 0, 1, 1], [], []>} : vector<32x32xf32>, vector<32x8xf32>, vector<32x8xf32> -> vector<32x8xf32>
    %36 = vector.extract_strided_slice %12 {offsets = [0, 0], sizes = [1, 8], strides = [1, 1]} : vector<1x64xf32> to vector<1x8xf32>
    %37 = vector.broadcast %36 : vector<1x8xf32> to vector<32x8xf32>
    %38 = arith.addf %35, %37 : vector<32x8xf32>
    %cst_20 = arith.constant 0.000000e+00 : f32
    %39 = vector.broadcast %cst_20 : f32 to vector<32x8xf32>
    %40 = arith.maximumf %38, %39 : vector<32x8xf32>
    %c0_21 = arith.constant 0 : index
    %c0_22 = arith.constant 0 : index
    %41 = vector.load %arg11[%c0_21, %c0_22] : memref<32x64xf32, #tpu.memory_space<vmem>>, vector<32x8xf32>
    tpu.vector_store %arg11[%c0_21, %c0_22], %40 {strides = array<i32>} : memref<32x64xf32, #tpu.memory_space<vmem>>, vector<32x8xf32>,
    %42 = vector.extract_strided_slice %7 {offsets = [0, 8], sizes = [32, 8], strides = [1, 1]} : vector<32x64xf32> to vector<32x8xf32>
    %43 = vector.extract_strided_slice %9 {offsets = [0, 1], sizes = [32, 1], strides = [1, 1]} : vector<32x8xf32> to vector<32x1xf32>
    %44 = vector.extract_strided_slice %11 {offsets = [1, 0], sizes = [1, 32], strides = [1, 1]} : vector<8x32xf32> to vector<1x32xf32>
    %45 = vector.broadcast %43 : vector<32x1xf32> to vector<32x32xf32>
    %46 = vector.broadcast %44 : vector<1x32xf32> to vector<32x32xf32>
    %47 = arith.addf %45, %46 : vector<32x32xf32>
    %cst_23 = arith.constant 0.000000e+00 : f32
    %48 = vector.broadcast %cst_23 : f32 to vector<32x32xf32>
    %49 = arith.cmpf ogt, %47, %48 : vector<32x32xf32>
    %cst_24 = arith.constant 2.000000e-01 : f32
    %50 = vector.broadcast %cst_24 : f32 to vector<32x32xf32>
    %51 = arith.mulf %50, %47 : vector<32x32xf32>
    %52 = arith.select %49, %47, %51 : vector<32x32xi1>, vector<32x32xf32>
    %53 = arith.addf %52, %5 : vector<32x32xf32>
    %cst_25 = arith.constant dense<0xFF800000> : vector<32xf32>
    %54 = vector.multi_reduction <maximumf>, %53, %cst_25 [1] : vector<32x32xf32> to vector<32xf32>
    %55 = vector.shape_cast %54 : vector<32xf32> to vector<32x1xf32>
    %56 = vector.broadcast %55 : vector<32x1xf32> to vector<32x32xf32>
    %57 = arith.subf %53, %56 : vector<32x32xf32>
    %58 = math.exp %57 : vector<32x32xf32>
    %cst_26 = arith.constant dense<0.000000e+00> : vector<32xf32>
    %59 = vector.multi_reduction <add>, %58, %cst_26 [1] : vector<32x32xf32> to vector<32xf32>
    %60 = vector.shape_cast %59 : vector<32xf32> to vector<32x1xf32>
    %61 = tpu.reciprocal %60 {approx = true} : vector<32x1xf32> -> vector<32x1xf32>
    %62 = vector.broadcast %61 : vector<32x1xf32> to vector<32x32xf32>
    %63 = arith.mulf %58, %62 : vector<32x32xf32>
    %cst_27 = arith.constant dense<0.000000e+00> : vector<32x8xf32>
    %64 = tpu.matmul %63, %42, %cst_27 {dimension_numbers = #tpu.dot_dimension_numbers<[1], [0], [0], [1], [0, 0, 1, 1], [], []>} : vector<32x32xf32>, vector<32x8xf32>, vector<32x8xf32> -> vector<32x8xf32>
    %65 = vector.extract_strided_slice %12 {offsets = [0, 8], sizes = [1, 8], strides = [1, 1]} : vector<1x64xf32> to vector<1x8xf32>
    %66 = vector.broadcast %65 : vector<1x8xf32> to vector<32x8xf32>
    %67 = arith.addf %64, %66 : vector<32x8xf32>
    %cst_28 = arith.constant 0.000000e+00 : f32
    %68 = vector.broadcast %cst_28 : f32 to vector<32x8xf32>
    %69 = arith.maximumf %67, %68 : vector<32x8xf32>
    %c0_29 = arith.constant 0 : index
    %c8 = arith.constant 8 : index
    %70 = vector.load %arg11[%c0_29, %c8] : memref<32x64xf32, #tpu.memory_space<vmem>>, vector<32x8xf32>
    tpu.vector_store %arg11[%c0_29, %c8], %69 {strides = array<i32>} : memref<32x64xf32, #tpu.memory_space<vmem>>, vector<32x8xf32>,
    %71 = vector.extract_strided_slice %7 {offsets = [0, 16], sizes = [32, 8], strides = [1, 1]} : vector<32x64xf32> to vector<32x8xf32>
    %72 = vector.extract_strided_slice %9 {offsets = [0, 2], sizes = [32, 1], strides = [1, 1]} : vector<32x8xf32> to vector<32x1xf32>
    %73 = vector.extract_strided_slice %11 {offsets = [2, 0], sizes = [1, 32], strides = [1, 1]} : vector<8x32xf32> to vector<1x32xf32>
    %74 = vector.broadcast %72 : vector<32x1xf32> to vector<32x32xf32>
    %75 = vector.broadcast %73 : vector<1x32xf32> to vector<32x32xf32>
    %76 = arith.addf %74, %75 : vector<32x32xf32>
    %cst_30 = arith.constant 0.000000e+00 : f32
    %77 = vector.broadcast %cst_30 : f32 to vector<32x32xf32>
    %78 = arith.cmpf ogt, %76, %77 : vector<32x32xf32>
    %cst_31 = arith.constant 2.000000e-01 : f32
    %79 = vector.broadcast %cst_31 : f32 to vector<32x32xf32>
    %80 = arith.mulf %79, %76 : vector<32x32xf32>
    %81 = arith.select %78, %76, %80 : vector<32x32xi1>, vector<32x32xf32>
    %82 = arith.addf %81, %5 : vector<32x32xf32>
    %cst_32 = arith.constant dense<0xFF800000> : vector<32xf32>
    %83 = vector.multi_reduction <maximumf>, %82, %cst_32 [1] : vector<32x32xf32> to vector<32xf32>
    %84 = vector.shape_cast %83 : vector<32xf32> to vector<32x1xf32>
    %85 = vector.broadcast %84 : vector<32x1xf32> to vector<32x32xf32>
    %86 = arith.subf %82, %85 : vector<32x32xf32>
    %87 = math.exp %86 : vector<32x32xf32>
    %cst_33 = arith.constant dense<0.000000e+00> : vector<32xf32>
    %88 = vector.multi_reduction <add>, %87, %cst_33 [1] : vector<32x32xf32> to vector<32xf32>
    %89 = vector.shape_cast %88 : vector<32xf32> to vector<32x1xf32>
    %90 = tpu.reciprocal %89 {approx = true} : vector<32x1xf32> -> vector<32x1xf32>
    %91 = vector.broadcast %90 : vector<32x1xf32> to vector<32x32xf32>
    %92 = arith.mulf %87, %91 : vector<32x32xf32>
    %cst_34 = arith.constant dense<0.000000e+00> : vector<32x8xf32>
    %93 = tpu.matmul %92, %71, %cst_34 {dimension_numbers = #tpu.dot_dimension_numbers<[1], [0], [0], [1], [0, 0, 1, 1], [], []>} : vector<32x32xf32>, vector<32x8xf32>, vector<32x8xf32> -> vector<32x8xf32>
    %94 = vector.extract_strided_slice %12 {offsets = [0, 16], sizes = [1, 8], strides = [1, 1]} : vector<1x64xf32> to vector<1x8xf32>
    %95 = vector.broadcast %94 : vector<1x8xf32> to vector<32x8xf32>
    %96 = arith.addf %93, %95 : vector<32x8xf32>
    %cst_35 = arith.constant 0.000000e+00 : f32
    %97 = vector.broadcast %cst_35 : f32 to vector<32x8xf32>
    %98 = arith.maximumf %96, %97 : vector<32x8xf32>
    %c0_36 = arith.constant 0 : index
    %c16 = arith.constant 16 : index
    %99 = vector.load %arg11[%c0_36, %c16] : memref<32x64xf32, #tpu.memory_space<vmem>>, vector<32x8xf32>
    tpu.vector_store %arg11[%c0_36, %c16], %98 {strides = array<i32>} : memref<32x64xf32, #tpu.memory_space<vmem>>, vector<32x8xf32>,
    %100 = vector.extract_strided_slice %7 {offsets = [0, 24], sizes = [32, 8], strides = [1, 1]} : vector<32x64xf32> to vector<32x8xf32>
    %101 = vector.extract_strided_slice %9 {offsets = [0, 3], sizes = [32, 1], strides = [1, 1]} : vector<32x8xf32> to vector<32x1xf32>
    %102 = vector.extract_strided_slice %11 {offsets = [3, 0], sizes = [1, 32], strides = [1, 1]} : vector<8x32xf32> to vector<1x32xf32>
    %103 = vector.broadcast %101 : vector<32x1xf32> to vector<32x32xf32>
    %104 = vector.broadcast %102 : vector<1x32xf32> to vector<32x32xf32>
    %105 = arith.addf %103, %104 : vector<32x32xf32>
    %cst_37 = arith.constant 0.000000e+00 : f32
    %106 = vector.broadcast %cst_37 : f32 to vector<32x32xf32>
    %107 = arith.cmpf ogt, %105, %106 : vector<32x32xf32>
    %cst_38 = arith.constant 2.000000e-01 : f32
    %108 = vector.broadcast %cst_38 : f32 to vector<32x32xf32>
    %109 = arith.mulf %108, %105 : vector<32x32xf32>
    %110 = arith.select %107, %105, %109 : vector<32x32xi1>, vector<32x32xf32>
    %111 = arith.addf %110, %5 : vector<32x32xf32>
    %cst_39 = arith.constant dense<0xFF800000> : vector<32xf32>
    %112 = vector.multi_reduction <maximumf>, %111, %cst_39 [1] : vector<32x32xf32> to vector<32xf32>
    %113 = vector.shape_cast %112 : vector<32xf32> to vector<32x1xf32>
    %114 = vector.broadcast %113 : vector<32x1xf32> to vector<32x32xf32>
    %115 = arith.subf %111, %114 : vector<32x32xf32>
    %116 = math.exp %115 : vector<32x32xf32>
    %cst_40 = arith.constant dense<0.000000e+00> : vector<32xf32>
    %117 = vector.multi_reduction <add>, %116, %cst_40 [1] : vector<32x32xf32> to vector<32xf32>
    %118 = vector.shape_cast %117 : vector<32xf32> to vector<32x1xf32>
    %119 = tpu.reciprocal %118 {approx = true} : vector<32x1xf32> -> vector<32x1xf32>
    %120 = vector.broadcast %119 : vector<32x1xf32> to vector<32x32xf32>
    %121 = arith.mulf %116, %120 : vector<32x32xf32>
    %cst_41 = arith.constant dense<0.000000e+00> : vector<32x8xf32>
    %122 = tpu.matmul %121, %100, %cst_41 {dimension_numbers = #tpu.dot_dimension_numbers<[1], [0], [0], [1], [0, 0, 1, 1], [], []>} : vector<32x32xf32>, vector<32x8xf32>, vector<32x8xf32> -> vector<32x8xf32>
    %123 = vector.extract_strided_slice %12 {offsets = [0, 24], sizes = [1, 8], strides = [1, 1]} : vector<1x64xf32> to vector<1x8xf32>
    %124 = vector.broadcast %123 : vector<1x8xf32> to vector<32x8xf32>
    %125 = arith.addf %122, %124 : vector<32x8xf32>
    %cst_42 = arith.constant 0.000000e+00 : f32
    %126 = vector.broadcast %cst_42 : f32 to vector<32x8xf32>
    %127 = arith.maximumf %125, %126 : vector<32x8xf32>
    %c0_43 = arith.constant 0 : index
    %c24 = arith.constant 24 : index
    %128 = vector.load %arg11[%c0_43, %c24] : memref<32x64xf32, #tpu.memory_space<vmem>>, vector<32x8xf32>
    tpu.vector_store %arg11[%c0_43, %c24], %127 {strides = array<i32>} : memref<32x64xf32, #tpu.memory_space<vmem>>, vector<32x8xf32>,
    %129 = vector.extract_strided_slice %7 {offsets = [0, 32], sizes = [32, 8], strides = [1, 1]} : vector<32x64xf32> to vector<32x8xf32>
    %130 = vector.extract_strided_slice %9 {offsets = [0, 4], sizes = [32, 1], strides = [1, 1]} : vector<32x8xf32> to vector<32x1xf32>
    %131 = vector.extract_strided_slice %11 {offsets = [4, 0], sizes = [1, 32], strides = [1, 1]} : vector<8x32xf32> to vector<1x32xf32>
    %132 = vector.broadcast %130 : vector<32x1xf32> to vector<32x32xf32>
    %133 = vector.broadcast %131 : vector<1x32xf32> to vector<32x32xf32>
    %134 = arith.addf %132, %133 : vector<32x32xf32>
    %cst_44 = arith.constant 0.000000e+00 : f32
    %135 = vector.broadcast %cst_44 : f32 to vector<32x32xf32>
    %136 = arith.cmpf ogt, %134, %135 : vector<32x32xf32>
    %cst_45 = arith.constant 2.000000e-01 : f32
    %137 = vector.broadcast %cst_45 : f32 to vector<32x32xf32>
    %138 = arith.mulf %137, %134 : vector<32x32xf32>
    %139 = arith.select %136, %134, %138 : vector<32x32xi1>, vector<32x32xf32>
    %140 = arith.addf %139, %5 : vector<32x32xf32>
    %cst_46 = arith.constant dense<0xFF800000> : vector<32xf32>
    %141 = vector.multi_reduction <maximumf>, %140, %cst_46 [1] : vector<32x32xf32> to vector<32xf32>
    %142 = vector.shape_cast %141 : vector<32xf32> to vector<32x1xf32>
    %143 = vector.broadcast %142 : vector<32x1xf32> to vector<32x32xf32>
    %144 = arith.subf %140, %143 : vector<32x32xf32>
    %145 = math.exp %144 : vector<32x32xf32>
    %cst_47 = arith.constant dense<0.000000e+00> : vector<32xf32>
    %146 = vector.multi_reduction <add>, %145, %cst_47 [1] : vector<32x32xf32> to vector<32xf32>
    %147 = vector.shape_cast %146 : vector<32xf32> to vector<32x1xf32>
    %148 = tpu.reciprocal %147 {approx = true} : vector<32x1xf32> -> vector<32x1xf32>
    %149 = vector.broadcast %148 : vector<32x1xf32> to vector<32x32xf32>
    %150 = arith.mulf %145, %149 : vector<32x32xf32>
    %cst_48 = arith.constant dense<0.000000e+00> : vector<32x8xf32>
    %151 = tpu.matmul %150, %129, %cst_48 {dimension_numbers = #tpu.dot_dimension_numbers<[1], [0], [0], [1], [0, 0, 1, 1], [], []>} : vector<32x32xf32>, vector<32x8xf32>, vector<32x8xf32> -> vector<32x8xf32>
    %152 = vector.extract_strided_slice %12 {offsets = [0, 32], sizes = [1, 8], strides = [1, 1]} : vector<1x64xf32> to vector<1x8xf32>
    %153 = vector.broadcast %152 : vector<1x8xf32> to vector<32x8xf32>
    %154 = arith.addf %151, %153 : vector<32x8xf32>
    %cst_49 = arith.constant 0.000000e+00 : f32
    %155 = vector.broadcast %cst_49 : f32 to vector<32x8xf32>
    %156 = arith.maximumf %154, %155 : vector<32x8xf32>
    %c0_50 = arith.constant 0 : index
    %c32 = arith.constant 32 : index
    %157 = vector.load %arg11[%c0_50, %c32] : memref<32x64xf32, #tpu.memory_space<vmem>>, vector<32x8xf32>
    tpu.vector_store %arg11[%c0_50, %c32], %156 {strides = array<i32>} : memref<32x64xf32, #tpu.memory_space<vmem>>, vector<32x8xf32>,
    %158 = vector.extract_strided_slice %7 {offsets = [0, 40], sizes = [32, 8], strides = [1, 1]} : vector<32x64xf32> to vector<32x8xf32>
    %159 = vector.extract_strided_slice %9 {offsets = [0, 5], sizes = [32, 1], strides = [1, 1]} : vector<32x8xf32> to vector<32x1xf32>
    %160 = vector.extract_strided_slice %11 {offsets = [5, 0], sizes = [1, 32], strides = [1, 1]} : vector<8x32xf32> to vector<1x32xf32>
    %161 = vector.broadcast %159 : vector<32x1xf32> to vector<32x32xf32>
    %162 = vector.broadcast %160 : vector<1x32xf32> to vector<32x32xf32>
    %163 = arith.addf %161, %162 : vector<32x32xf32>
    %cst_51 = arith.constant 0.000000e+00 : f32
    %164 = vector.broadcast %cst_51 : f32 to vector<32x32xf32>
    %165 = arith.cmpf ogt, %163, %164 : vector<32x32xf32>
    %cst_52 = arith.constant 2.000000e-01 : f32
    %166 = vector.broadcast %cst_52 : f32 to vector<32x32xf32>
    %167 = arith.mulf %166, %163 : vector<32x32xf32>
    %168 = arith.select %165, %163, %167 : vector<32x32xi1>, vector<32x32xf32>
    %169 = arith.addf %168, %5 : vector<32x32xf32>
    %cst_53 = arith.constant dense<0xFF800000> : vector<32xf32>
    %170 = vector.multi_reduction <maximumf>, %169, %cst_53 [1] : vector<32x32xf32> to vector<32xf32>
    %171 = vector.shape_cast %170 : vector<32xf32> to vector<32x1xf32>
    %172 = vector.broadcast %171 : vector<32x1xf32> to vector<32x32xf32>
    %173 = arith.subf %169, %172 : vector<32x32xf32>
    %174 = math.exp %173 : vector<32x32xf32>
    %cst_54 = arith.constant dense<0.000000e+00> : vector<32xf32>
    %175 = vector.multi_reduction <add>, %174, %cst_54 [1] : vector<32x32xf32> to vector<32xf32>
    %176 = vector.shape_cast %175 : vector<32xf32> to vector<32x1xf32>
    %177 = tpu.reciprocal %176 {approx = true} : vector<32x1xf32> -> vector<32x1xf32>
    %178 = vector.broadcast %177 : vector<32x1xf32> to vector<32x32xf32>
    %179 = arith.mulf %174, %178 : vector<32x32xf32>
    %cst_55 = arith.constant dense<0.000000e+00> : vector<32x8xf32>
    %180 = tpu.matmul %179, %158, %cst_55 {dimension_numbers = #tpu.dot_dimension_numbers<[1], [0], [0], [1], [0, 0, 1, 1], [], []>} : vector<32x32xf32>, vector<32x8xf32>, vector<32x8xf32> -> vector<32x8xf32>
    %181 = vector.extract_strided_slice %12 {offsets = [0, 40], sizes = [1, 8], strides = [1, 1]} : vector<1x64xf32> to vector<1x8xf32>
    %182 = vector.broadcast %181 : vector<1x8xf32> to vector<32x8xf32>
    %183 = arith.addf %180, %182 : vector<32x8xf32>
    %cst_56 = arith.constant 0.000000e+00 : f32
    %184 = vector.broadcast %cst_56 : f32 to vector<32x8xf32>
    %185 = arith.maximumf %183, %184 : vector<32x8xf32>
    %c0_57 = arith.constant 0 : index
    %c40 = arith.constant 40 : index
    %186 = vector.load %arg11[%c0_57, %c40] : memref<32x64xf32, #tpu.memory_space<vmem>>, vector<32x8xf32>
    tpu.vector_store %arg11[%c0_57, %c40], %185 {strides = array<i32>} : memref<32x64xf32, #tpu.memory_space<vmem>>, vector<32x8xf32>,
    %187 = vector.extract_strided_slice %7 {offsets = [0, 48], sizes = [32, 8], strides = [1, 1]} : vector<32x64xf32> to vector<32x8xf32>
    %188 = vector.extract_strided_slice %9 {offsets = [0, 6], sizes = [32, 1], strides = [1, 1]} : vector<32x8xf32> to vector<32x1xf32>
    %189 = vector.extract_strided_slice %11 {offsets = [6, 0], sizes = [1, 32], strides = [1, 1]} : vector<8x32xf32> to vector<1x32xf32>
    %190 = vector.broadcast %188 : vector<32x1xf32> to vector<32x32xf32>
    %191 = vector.broadcast %189 : vector<1x32xf32> to vector<32x32xf32>
    %192 = arith.addf %190, %191 : vector<32x32xf32>
    %cst_58 = arith.constant 0.000000e+00 : f32
    %193 = vector.broadcast %cst_58 : f32 to vector<32x32xf32>
    %194 = arith.cmpf ogt, %192, %193 : vector<32x32xf32>
    %cst_59 = arith.constant 2.000000e-01 : f32
    %195 = vector.broadcast %cst_59 : f32 to vector<32x32xf32>
    %196 = arith.mulf %195, %192 : vector<32x32xf32>
    %197 = arith.select %194, %192, %196 : vector<32x32xi1>, vector<32x32xf32>
    %198 = arith.addf %197, %5 : vector<32x32xf32>
    %cst_60 = arith.constant dense<0xFF800000> : vector<32xf32>
    %199 = vector.multi_reduction <maximumf>, %198, %cst_60 [1] : vector<32x32xf32> to vector<32xf32>
    %200 = vector.shape_cast %199 : vector<32xf32> to vector<32x1xf32>
    %201 = vector.broadcast %200 : vector<32x1xf32> to vector<32x32xf32>
    %202 = arith.subf %198, %201 : vector<32x32xf32>
    %203 = math.exp %202 : vector<32x32xf32>
    %cst_61 = arith.constant dense<0.000000e+00> : vector<32xf32>
    %204 = vector.multi_reduction <add>, %203, %cst_61 [1] : vector<32x32xf32> to vector<32xf32>
    %205 = vector.shape_cast %204 : vector<32xf32> to vector<32x1xf32>
    %206 = tpu.reciprocal %205 {approx = true} : vector<32x1xf32> -> vector<32x1xf32>
    %207 = vector.broadcast %206 : vector<32x1xf32> to vector<32x32xf32>
    %208 = arith.mulf %203, %207 : vector<32x32xf32>
    %cst_62 = arith.constant dense<0.000000e+00> : vector<32x8xf32>
    %209 = tpu.matmul %208, %187, %cst_62 {dimension_numbers = #tpu.dot_dimension_numbers<[1], [0], [0], [1], [0, 0, 1, 1], [], []>} : vector<32x32xf32>, vector<32x8xf32>, vector<32x8xf32> -> vector<32x8xf32>
    %210 = vector.extract_strided_slice %12 {offsets = [0, 48], sizes = [1, 8], strides = [1, 1]} : vector<1x64xf32> to vector<1x8xf32>
    %211 = vector.broadcast %210 : vector<1x8xf32> to vector<32x8xf32>
    %212 = arith.addf %209, %211 : vector<32x8xf32>
    %cst_63 = arith.constant 0.000000e+00 : f32
    %213 = vector.broadcast %cst_63 : f32 to vector<32x8xf32>
    %214 = arith.maximumf %212, %213 : vector<32x8xf32>
    %c0_64 = arith.constant 0 : index
    %c48 = arith.constant 48 : index
    %215 = vector.load %arg11[%c0_64, %c48] : memref<32x64xf32, #tpu.memory_space<vmem>>, vector<32x8xf32>
    tpu.vector_store %arg11[%c0_64, %c48], %214 {strides = array<i32>} : memref<32x64xf32, #tpu.memory_space<vmem>>, vector<32x8xf32>,
    %216 = vector.extract_strided_slice %7 {offsets = [0, 56], sizes = [32, 8], strides = [1, 1]} : vector<32x64xf32> to vector<32x8xf32>
    %217 = vector.extract_strided_slice %9 {offsets = [0, 7], sizes = [32, 1], strides = [1, 1]} : vector<32x8xf32> to vector<32x1xf32>
    %218 = vector.extract_strided_slice %11 {offsets = [7, 0], sizes = [1, 32], strides = [1, 1]} : vector<8x32xf32> to vector<1x32xf32>
    %219 = vector.broadcast %217 : vector<32x1xf32> to vector<32x32xf32>
    %220 = vector.broadcast %218 : vector<1x32xf32> to vector<32x32xf32>
    %221 = arith.addf %219, %220 : vector<32x32xf32>
    %cst_65 = arith.constant 0.000000e+00 : f32
    %222 = vector.broadcast %cst_65 : f32 to vector<32x32xf32>
    %223 = arith.cmpf ogt, %221, %222 : vector<32x32xf32>
    %cst_66 = arith.constant 2.000000e-01 : f32
    %224 = vector.broadcast %cst_66 : f32 to vector<32x32xf32>
    %225 = arith.mulf %224, %221 : vector<32x32xf32>
    %226 = arith.select %223, %221, %225 : vector<32x32xi1>, vector<32x32xf32>
    %227 = arith.addf %226, %5 : vector<32x32xf32>
    %cst_67 = arith.constant dense<0xFF800000> : vector<32xf32>
    %228 = vector.multi_reduction <maximumf>, %227, %cst_67 [1] : vector<32x32xf32> to vector<32xf32>
    %229 = vector.shape_cast %228 : vector<32xf32> to vector<32x1xf32>
    %230 = vector.broadcast %229 : vector<32x1xf32> to vector<32x32xf32>
    %231 = arith.subf %227, %230 : vector<32x32xf32>
    %232 = math.exp %231 : vector<32x32xf32>
    %cst_68 = arith.constant dense<0.000000e+00> : vector<32xf32>
    %233 = vector.multi_reduction <add>, %232, %cst_68 [1] : vector<32x32xf32> to vector<32xf32>
    %234 = vector.shape_cast %233 : vector<32xf32> to vector<32x1xf32>
    %235 = tpu.reciprocal %234 {approx = true} : vector<32x1xf32> -> vector<32x1xf32>
    %236 = vector.broadcast %235 : vector<32x1xf32> to vector<32x32xf32>
    %237 = arith.mulf %232, %236 : vector<32x32xf32>
    %cst_69 = arith.constant dense<0.000000e+00> : vector<32x8xf32>
    %238 = tpu.matmul %237, %216, %cst_69 {dimension_numbers = #tpu.dot_dimension_numbers<[1], [0], [0], [1], [0, 0, 1, 1], [], []>} : vector<32x32xf32>, vector<32x8xf32>, vector<32x8xf32> -> vector<32x8xf32>
    %239 = vector.extract_strided_slice %12 {offsets = [0, 56], sizes = [1, 8], strides = [1, 1]} : vector<1x64xf32> to vector<1x8xf32>
    %240 = vector.broadcast %239 : vector<1x8xf32> to vector<32x8xf32>
    %241 = arith.addf %238, %240 : vector<32x8xf32>
    %cst_70 = arith.constant 0.000000e+00 : f32
    %242 = vector.broadcast %cst_70 : f32 to vector<32x8xf32>
    %243 = arith.maximumf %241, %242 : vector<32x8xf32>
    %c0_71 = arith.constant 0 : index
    %c56 = arith.constant 56 : index
    %244 = vector.load %arg11[%c0_71, %c56] : memref<32x64xf32, #tpu.memory_space<vmem>>, vector<32x8xf32>
    tpu.vector_store %arg11[%c0_71, %c56], %243 {strides = array<i32>} : memref<32x64xf32, #tpu.memory_space<vmem>>, vector<32x8xf32>,
    %c0_72 = arith.constant 0 : index
    %c0_73 = arith.constant 0 : index
    %245 = vector.load %arg11[%c0_72, %c0_73] : memref<32x64xf32, #tpu.memory_space<vmem>>, vector<32x64xf32>
    %c0_74 = arith.constant 0 : index
    %c0_75 = arith.constant 0 : index
    %246 = vector.load %arg6[%c0_74, %c0_75] : memref<64x4xf32, #tpu.memory_space<vmem>>, vector<64x4xf32>
    %cst_76 = arith.constant dense<0.000000e+00> : vector<32x4xf32>
    %247 = tpu.matmul %245, %246, %cst_76 {dimension_numbers = #tpu.dot_dimension_numbers<[1], [0], [0], [1], [0, 0, 1, 1], [], []>} : vector<32x64xf32>, vector<64x4xf32>, vector<32x4xf32> -> vector<32x4xf32>
    %c0_77 = arith.constant 0 : index
    %c0_78 = arith.constant 0 : index
    %248 = vector.load %arg7[%c0_77, %c0_78] : memref<4x1xf32, #tpu.memory_space<vmem>>, vector<4x1xf32>
    %cst_79 = arith.constant dense<0.000000e+00> : vector<32x1xf32>
    %249 = tpu.matmul %247, %248, %cst_79 {dimension_numbers = #tpu.dot_dimension_numbers<[1], [0], [0], [1], [0, 0, 1, 1], [], []>} : vector<32x4xf32>, vector<4x1xf32>, vector<32x1xf32> -> vector<32x1xf32>
    %c0_80 = arith.constant 0 : index
    %c0_81 = arith.constant 0 : index
    %250 = vector.load %arg8[%c0_80, %c0_81] : memref<1x4xf32, #tpu.memory_space<vmem>>, vector<1x4xf32>
    %cst_82 = arith.constant dense<0.000000e+00> : vector<1x32xf32>
    %251 = tpu.matmul %250, %247, %cst_82 {dimension_numbers = #tpu.dot_dimension_numbers<[1], [1], [0], [0], [0, 0, 1, 0], [], []>} : vector<1x4xf32>, vector<32x4xf32>, vector<1x32xf32> -> vector<1x32xf32>
    %252 = vector.broadcast %249 : vector<32x1xf32> to vector<32x32xf32>
    %253 = vector.broadcast %251 : vector<1x32xf32> to vector<32x32xf32>
    %254 = arith.addf %252, %253 : vector<32x32xf32>
    %cst_83 = arith.constant 0.000000e+00 : f32
    %255 = vector.broadcast %cst_83 : f32 to vector<32x32xf32>
    %256 = arith.cmpf ogt, %254, %255 : vector<32x32xf32>
    %cst_84 = arith.constant 2.000000e-01 : f32
    %257 = vector.broadcast %cst_84 : f32 to vector<32x32xf32>
    %258 = arith.mulf %257, %254 : vector<32x32xf32>
    %259 = arith.select %256, %254, %258 : vector<32x32xi1>, vector<32x32xf32>
    %260 = arith.addf %259, %5 : vector<32x32xf32>
    %cst_85 = arith.constant dense<0xFF800000> : vector<32xf32>
    %261 = vector.multi_reduction <maximumf>, %260, %cst_85 [1] : vector<32x32xf32> to vector<32xf32>
    %262 = vector.shape_cast %261 : vector<32xf32> to vector<32x1xf32>
    %263 = vector.broadcast %262 : vector<32x1xf32> to vector<32x32xf32>
    %264 = arith.subf %260, %263 : vector<32x32xf32>
    %265 = math.exp %264 : vector<32x32xf32>
    %cst_86 = arith.constant dense<0.000000e+00> : vector<32xf32>
    %266 = vector.multi_reduction <add>, %265, %cst_86 [1] : vector<32x32xf32> to vector<32xf32>
    %267 = vector.shape_cast %266 : vector<32xf32> to vector<32x1xf32>
    %268 = tpu.reciprocal %267 {approx = true} : vector<32x1xf32> -> vector<32x1xf32>
    %269 = vector.broadcast %268 : vector<32x1xf32> to vector<32x32xf32>
    %270 = arith.mulf %265, %269 : vector<32x32xf32>
    %cst_87 = arith.constant dense<0.000000e+00> : vector<32x4xf32>
    %271 = tpu.matmul %270, %247, %cst_87 {dimension_numbers = #tpu.dot_dimension_numbers<[1], [0], [0], [1], [0, 0, 1, 1], [], []>} : vector<32x32xf32>, vector<32x4xf32>, vector<32x4xf32> -> vector<32x4xf32>
    %c0_88 = arith.constant 0 : index
    %c0_89 = arith.constant 0 : index
    %272 = vector.load %arg9[%c0_88, %c0_89] : memref<1x4xf32, #tpu.memory_space<vmem>>, vector<1x4xf32>
    %273 = vector.broadcast %272 : vector<1x4xf32> to vector<32x4xf32>
    %274 = arith.addf %271, %273 : vector<32x4xf32>
    %cst_90 = arith.constant dense<0xFF800000> : vector<32xf32>
    %275 = vector.multi_reduction <maximumf>, %274, %cst_90 [1] : vector<32x4xf32> to vector<32xf32>
    %276 = vector.shape_cast %275 : vector<32xf32> to vector<32x1xf32>
    %277 = vector.broadcast %276 : vector<32x1xf32> to vector<32x4xf32>
    %278 = arith.subf %274, %277 : vector<32x4xf32>
    %279 = math.exp %278 : vector<32x4xf32>
    %cst_91 = arith.constant dense<0.000000e+00> : vector<32xf32>
    %280 = vector.multi_reduction <add>, %279, %cst_91 [1] : vector<32x4xf32> to vector<32xf32>
    %281 = vector.shape_cast %280 : vector<32xf32> to vector<32x1xf32>
    %282 = math.log %281 : vector<32x1xf32>
    %283 = arith.addf %276, %282 : vector<32x1xf32>
    %284 = vector.broadcast %283 : vector<32x1xf32> to vector<32x4xf32>
    %285 = arith.subf %274, %284 : vector<32x4xf32>
    %c0_92 = arith.constant 0 : index
    %c0_93 = arith.constant 0 : index
    %286 = vector.load %arg10[%c0_92, %c0_93] : memref<32x4xf32, #tpu.memory_space<vmem>>, vector<32x4xf32>
    tpu.vector_store %arg10[%c0_92, %c0_93], %285 {strides = array<i32>} : memref<32x4xf32, #tpu.memory_space<vmem>>, vector<32x4xf32>,
    return
  }
}

</mosaic_0001>

<bundles_post_ra>
// kernel: tpu_custom_call.1
= control target key start
LH: loop header
LB: loop body
LE: loop exit
PB: predicated region body
PF: predicated region fallthrough
CT: control target
= control target key end

     0   :  { %vm53_vm0 = vcmask 130048   ;;  %vm103_vm1 = vcmask 523264   ;;  %s2117_s20 = smov 112   ;;  %s2120_s21 = smov 88   ;;  %v2122_v21 = vmov 5   ;;  %v2123_v22 = vmov 3   ;;  %s3040_s2 = inlined_call_operand.vmem [shape: f32[16,64], index: 2, kind: input, shape index: {}]   ;;  %s3041_s0 = inlined_call_operand.vmem [shape: f32[32,16], index: 0, kind: input, shape index: {}]   ;;  %s3042_s3 = inlined_call_operand.vmem [shape: f32[64,8], index: 3, kind: input, shape index: {}]   ;;  %s3043_s4 = inlined_call_operand.vmem [shape: f32[8,64], index: 4, kind: input, shape index: {}]   ;;  %s3044_s1 = inlined_call_operand.vmem [shape: f32[32,32], index: 1, kind: input, shape index: {}]   ;;  %s3045_s5 = inlined_call_operand.vmem [shape: f32[1,64], index: 5, kind: input, shape index: {}]   ;;  %s3046_s6 = inlined_call_operand.vmem [shape: f32[64,4], index: 6, kind: input, shape index: {}]   ;;  %s3047_s7 = inlined_call_operand.vmem [shape: f32[4,1], index: 7, kind: input, shape index: {}]   ;;  %s3048_s8 = inlined_call_operand.vmem [shape: f32[1,4], index: 8, kind: input, shape index: {}]   ;;  %s3049_s9 = inlined_call_operand.vmem [shape: f32[1,4], index: 9, kind: input, shape index: {}]   ;;  %s3050_s10 = inlined_call_operand.vmem [shape: f32[32,4], index: 10, kind: output, shape index: {}]  }
   0x1   :  { %v52_v0 = vld [vmem:[%s3040_s2 + $0x8] sm:$0xff]  ;;  %v51_v1 = vld [vmem:[%s3040_s2] sm:$0xff]  ;;  %v102_v3 = vld [vmem:[%s3042_s3 + $0x38] sm:$0xff]  ;;  %s2121_s22 = smov 72   ;;  %1899 = vset.pattern.permute.xlu0 %v2122_v21  ;;  %1897 = vset.pattern.permute.xlu2 %v2123_v22  ;;  %v2124_v23 = vmov 0   ;;  %v2125_v27 = vmov 2  }
   0x2   :  { %80 = vmatpush.msra.mxu0 %v52_v0  ;;  %v35_v2 = vld [vmem:[%s3041_s0] sm:$0xff]  ;;  %v101_v4 = vld [vmem:[%s3042_s3 + $0x30] sm:$0xff]  ;;  %124 = vmatpush.msra.mxu1 %v102_v3  ;;  %v100_v5 = vld [vmem:[%s3042_s3 + $0x28] sm:$0xff]  ;;  %v2126_v28 = vmov 6   ;;  %v2127_v29 = vmov 1   ;;  %v2128_v34 = vmov 7  }
   0x3   :  { %v99_v6 = vld [vmem:[%s3042_s3 + $0x20] sm:$0xff]  ;;  %v98_v7 = vld [vmem:[%s3042_s3 + $0x18] sm:$0xff]  ;;  %v36_v8 = vld [vmem:[%s3041_s0 + $0x8] sm:$0xff]  ;;  %1895 = vset.pattern.permute.xlu1 %v2124_v23  ;;  %v2129_v46 = vmov 4   ;;  %vm211_vm3 = vcmask 261120   ;;  %s2131_s11 = smov 96  }
   0x4   :  { %81 = vmatpush.msra.mxu0 %v51_v1  ;;  %125 = vmatpush.msra.mxu1 %v101_v4  ;;  %v97_v9 = vld [vmem:[%s3042_s3 + $0x10] sm:$0xff]  ;;  %v96_v10 = vld [vmem:[%s3042_s3 + $0x8] sm:$0xff]  ;;  %v38_v12 = vld [vmem:[%s3041_s0 + $0x18] sm:$0xff]  ;;  %s2133_s14 = smov 16   ;;  %s2134_s15 = smov 32  }
   0x5   :  { %1757 = vmatmul.msk.f32.vlgmr.msra.gmra.mxu0 %vm53_vm0, %v35_v2  ;;  %v37_v11 = vld [vmem:[%s3041_s0 + $0x10] sm:$0xff]  ;;  %v95_v13 = vld [vmem:[%s3042_s3] sm:$0xff]  ;;  %s2118_s0 = smov 120   ;;  %s2119_s3 = smov 104  }
   0x6   :  { %126 = vmatpush.msra.mxu1 %v100_v5  ;;  %v145_v20 = vld [vmem:[%s3043_s4] sm:$0xff]  ;;  %s2135_s16 = smov 24   ;;  %s2136_s17 = smov 40  }
   0x7   :  { %v39_v63 = vld [vmem:[%s3044_s1] sm:$0xff]  ;;  %s2137_s18 = smov 48   ;;  %s2138_s19 = smov 56  }
   0x8   :  { %127 = vmatpush.msra.mxu1 %v99_v6  ;;  %v43_v2 = vsub.f32 1.0, %v39_v63 }
   0xa   :  { %128 = vmatpush.msra.mxu1 %v98_v7 }
   0xc   :  { %129 = vmatpush.msra.mxu1 %v97_v9 }
   0xd   :  { %1758 = vmatmul.msk.f32.gmra.mxu0 %vm53_vm0, %v36_v8  ;;  %v2319_v8 = vmul.f32 -1e+30, %v43_v2 }
   0xe   :  { %130 = vmatpush.msra.mxu1 %v96_v10 }
  0x10   :  { %131 = vmatpush.msra.mxu1 %v95_v13 }
  0x15   :  { %1759 = vmatmul.msk.f32.gmra.mxu0 %vm53_vm0, %v37_v11 }
  0x1d   :  { %1760 = vmatmul.msk.f32.gmra.mxu0 %vm53_vm0, %v38_v12 }
  0x82   :  { %v83_v14 = vpop.f32.mrf.mxu0 }
  0x83   :  { %1761 = vmatmul.msk.f32.vlgmr.msra.gmra.mxu1 %vm103_vm1, %v83_v14 }
  0x8a   :  { %v86_v15 = vpop.f32.mrf.mxu0 }
  0x8b   :  { %v2241_v16 = vpack.i.bf16 %v83_v14, %v86_v15  ;;  %1762 = vmatmul.msk.f32.gmra.mxu1 %vm103_vm1, %v86_v15 }
  0x8d   :  { %1861 = vrot.lane.b32.xlu0 %v2241_v16, %s2117_s20  ;;  %1851 = vrot.lane.b32.xlu2 %v2241_v16, %s2118_s0 }
  0x92   :  { %v89_v17 = vpop.f32.mrf.mxu0 }
  0x93   :  { %1763 = vmatmul.msk.f32.gmra.mxu1 %vm103_vm1, %v89_v17 }
  0x95   :  { %1856 = vrot.lane.b32.xlu2 %v2241_v16, %s2119_s3 }
  0x9a   :  { %v92_v18 = vpop.f32.mrf.mxu0 }
  0x9b   :  { %1765 = vmatpush.xpose.msk.msra.mxu2 %vm103_vm1, %v92_v18  ;;  %283 = vmatpush.msrb.mxu0 %v92_v18  ;;  %v2252_v19 = vpack.i.bf16 %v89_v17, %v92_v18 }
  0x9c   :  { %1820 = vmatpush.msrb.mxu1 %v92_v18  ;;  %1821 = vmatpush.msra.mxu3 %v92_v18 }
  0x9d   :  { %1866 = vrot.lane.b32.xlu2 %v2241_v16, %s2120_s21  ;;  %1876 = vrot.lane.b32.xlu0 %v2252_v19, %s2119_s3 }
  0x9e   :  { %1871 = vrot.lane.b32.xlu1 %v2252_v19, %s2118_s0  ;;  %284 = vmatpush.msrb.mxu0 %v89_v17 }
  0x9f   :  { %1822 = vmatpush.msrb.mxu1 %v89_v17  ;;  %1823 = vmatpush.msra.mxu3 %v89_v17 }
  0xa0   :  { %1766 = vmatpush.xpose.msk.msra.mxu2 %vm103_vm1, %v89_v17  ;;  %285 = vmatpush.msrb.mxu0 %v86_v15 }
  0xa1   :  { %1824 = vmatpush.msrb.mxu1 %v86_v15  ;;  %1825 = vmatpush.msra.mxu3 %v86_v15 }
  0xa2   :  { %286 = vmatpush.msrb.mxu0 %v83_v14  ;;  %1764 = vmatmul.msk.f32.gmra.mxu1 %vm103_vm1, %v92_v18 }
  0xa3   :  { %1826 = vmatpush.msrb.mxu1 %v83_v14  ;;  %1827 = vmatpush.msra.mxu3 %v83_v14 }
  0xa4   :  { %1767 = vmatpush.xpose.msk.msra.mxu2 %vm103_vm1, %v86_v15 }
  0xa5   :  { %1891 = vrot.lane.b32.xlu0 %v2252_v19, %s2121_s22 }
  0xa6   :  { %1881 = vrot.lane.b32.xlu1 %v2252_v19, %s2117_s20 }
  0xa8   :  { %1768 = vmatpush.xpose.msk.msra.mxu2 %vm103_vm1, %v83_v14 }
  0xab   :  { %1769 = vmatmul.msk.f32.vlgmr.msra.gmra.mxu2 %vm103_vm1, %v145_v20 }
  0xae   :  { %1886 = vrot.lane.b32.xlu1 %v2252_v19, %s2120_s21 }
  0xe7   :  { %v1852_v26 = vpop.permute.xlu2 %1851 }
  0xe8   :  { %v1853_v39 = vunpack.i.l.bf16 %v1852_v26  ;;  %v1854_v42 = vunpack.i.h.bf16 %v1852_v26 }
  0xef   :  { %v1857_v38 = vpop.permute.xlu2 %1856 }
  0xf0   :  { %v1858_v40 = vunpack.i.l.bf16 %v1857_v38  ;;  %v1859_v43 = vunpack.i.h.bf16 %v1857_v38 }
  0xf7   :  { %v1867_v52 = vpop.permute.xlu2 %1866 }
  0xf8   :  { %v1868_v54 = vunpack.i.l.bf16 %v1867_v52  ;;  %v1869_v55 = vunpack.i.h.bf16 %v1867_v52 }
  0xff   :  { %v1862_v25 = vpop.permute.xlu0 %1861 }
 0x100   :  { %v133_v24 = vpop.f32.mrf.mxu1  ;;  %v1863_v47 = vunpack.i.l.bf16 %v1862_v25  ;;  %v1864_v49 = vunpack.i.h.bf16 %v1862_v25 }
 0x101   :  { %634 = vperm.xlu2 %1897, %v133_v24   ;;  %958 = vperm.xlu0 %1899, %v133_v24  }
 0x102   :  { %172 = vperm.xlu1 %1895, %v133_v24  }
 0x108   :  { %v136_v35 = vpop.f32.mrf.mxu1 }
 0x109   :  { %1898 = vset.pattern.permute.xlu2 %v2125_v27  ;;  %1902 = vset.pattern.permute.xlu0 %v2126_v28 }
 0x10a   :  { %1896 = vset.pattern.permute.xlu1 %v2127_v29  ;;  %472 = vperm.xlu2 %1898, %v133_v24  }
 0x10b   :  { %1120 = vperm.xlu0 %1902, %v133_v24   ;;  %310 = vperm.xlu1 %1896, %v133_v24  }
 0x10f   :  { %v1877_v30 = vpop.permute.xlu0 %1876 }
 0x110   :  { %v1872_v31 = vpop.permute.xlu1 %1871  ;;  %v1878_v32 = vunpack.i.l.bf16 %v1877_v30  ;;  %v1879_v37 = vunpack.i.h.bf16 %v1877_v30  ;;  %v139_v53 = vpop.f32.mrf.mxu1 }
 0x111   :  { %v1873_v33 = vunpack.i.l.bf16 %v1872_v31  ;;  %v1874_v36 = vunpack.i.h.bf16 %v1872_v31 }
 0x112   :  { %1900 = vset.pattern.permute.xlu2 %v2128_v34  ;;  %753 = vmatpush.msrb.mxu3 %v1878_v32 }
 0x113   :  { %1903 = vset.pattern.permute.xlu0 %v2127_v29  ;;  %1904 = vset.pattern.permute.xlu1 %v2123_v22 }
 0x114   :  { %429 = vmatpush.msrb.mxu2 %v1873_v33  ;;  %1282 = vperm.xlu2 %1900, %v133_v24  }
 0x115   :  { %314 = vperm.xlu0 %1903, %v136_v35   ;;  %638 = vperm.xlu1 %1904, %v136_v35  }
 0x116   :  { %430 = vmatpush.msrb.mxu2 %v1874_v36  ;;  %754 = vmatpush.msrb.mxu3 %v1879_v37 }
 0x117   :  { %v2304_v59 = vpop.permute.xlu0 %1891 }
 0x118   :  { %431 = vmatpush.msrb.mxu2 %v1853_v39  ;;  %755 = vmatpush.msrb.mxu3 %v1858_v40  ;;  %v1882_v41 = vpop.permute.xlu1 %1881 }
 0x119   :  { %v1883_v44 = vunpack.i.l.bf16 %v1882_v41  ;;  %v1884_v45 = vunpack.i.h.bf16 %v1882_v41 }
 0x11a   :  { %432 = vmatpush.msrb.mxu2 %v1854_v42  ;;  %756 = vmatpush.msrb.mxu3 %v1859_v43 }
 0x11b   :  { %591 = vmatpush.msra.mxu0 %v1883_v44 }
 0x11c   :  { %1901 = vset.pattern.permute.xlu2 %v2129_v46 }
 0x11d   :  { %1908 = vset.pattern.permute.xlu0 %v2128_v34  ;;  %1906 = vset.pattern.permute.xlu1 %v2124_v23 }
 0x11e   :  { %796 = vperm.xlu2 %1901, %v133_v24   ;;  %1286 = vperm.xlu0 %1908, %v136_v35  }
 0x11f   :  { %177 = vperm.xlu1 %1906, %v136_v35   ;;  %592 = vmatpush.msra.mxu0 %v1884_v45  ;;  %v142_v56 = vpop.f32.mrf.mxu1 }
 0x120   :  { %v1887_v48 = vpop.permute.xlu1 %1886 }
 0x121   :  { %593 = vmatpush.msra.mxu0 %v1863_v47  ;;  %v1889_v50 = vunpack.i.h.bf16 %v1887_v48  ;;  %v1888_v51 = vunpack.i.l.bf16 %v1887_v48 }
 0x123   :  { %594 = vmatpush.msra.mxu0 %v1864_v49  ;;  %1077 = vmatpush.msra.mxu2 %v1888_v51 }
 0x125   :  { %1078 = vmatpush.msra.mxu2 %v1889_v50 }
 0x126   :  { %1905 = vset.pattern.permute.xlu2 %v2125_v27  ;;  %1911 = vset.pattern.permute.xlu0 %v2124_v23 }
 0x127   :  { %1909 = vset.pattern.permute.xlu1 %v2129_v46  ;;  %476 = vperm.xlu2 %1905, %v136_v35  }
 0x128   :  { %182 = vperm.xlu0 %1911, %v139_v53   ;;  %800 = vperm.xlu1 %1909, %v136_v35  }
 0x129   :  { %1079 = vmatpush.msra.mxu2 %v1868_v54 }
 0x12b   :  { %1080 = vmatpush.msra.mxu2 %v1869_v55 }
 0x12e   :  { %v166_v61 = vpop.f32.mrf.mxu2 }
 0x12f   :  { %1907 = vset.pattern.permute.xlu2 %v2122_v21  ;;  %v2307_v62 = vperm.slane %v166_v61, 0  ;;  %v2315_v4 = vperm.slane %v166_v61, 4  ;;  %v2317_v5 = vperm.slane %v166_v61, 3  ;;  %v2328_v18 = vperm.slane %v166_v61, 1 }
 0x130   :  { %1914 = vset.pattern.permute.xlu0 %v2125_v27  ;;  %1910 = vset.pattern.permute.xlu1 %v2126_v28  ;;  %v2344_v30 = vperm.slane %v166_v61, 2  ;;  %v2353_v40 = vperm.slane %v166_v61, 5 }
 0x131   :  { %962 = vperm.xlu2 %1907, %v136_v35   ;;  %480 = vperm.xlu0 %1914, %v139_v53  }
 0x132   :  { %1124 = vperm.xlu1 %1910, %v136_v35  }
 0x139   :  { %1913 = vset.pattern.permute.xlu2 %v2123_v22  ;;  %1916 = vset.pattern.permute.xlu0 %v2128_v34 }
 0x13a   :  { %1912 = vset.pattern.permute.xlu1 %v2127_v29  ;;  %642 = vperm.xlu2 %1913, %v139_v53  }
 0x13b   :  { %1290 = vperm.xlu0 %1916, %v139_v53   ;;  %318 = vperm.xlu1 %1912, %v139_v53  }
 0x142   :  { %1915 = vset.pattern.permute.xlu2 %v2122_v21 }
 0x143   :  { %1919 = vset.pattern.permute.xlu0 %v2124_v23  ;;  %1918 = vset.pattern.permute.xlu1 %v2126_v28 }
 0x144   :  { %966 = vperm.xlu2 %1915, %v139_v53   ;;  %1128 = vperm.xlu1 %1918, %v139_v53  }
 0x145   :  { %187 = vperm.xlu0 %1919, %v142_v56  }
 0x14c   :  { %1917 = vset.pattern.permute.xlu2 %v2129_v46  ;;  %1920 = vset.pattern.permute.xlu1 %v2127_v29  ;;  %v40_v29 = vld [vmem:[%s3044_s1 + $0x8] sm:$0xff] }
 0x14d   :  { %1925 = vset.pattern.permute.xlu0 %v2129_v46  ;;  %804 = vperm.xlu2 %1917, %v139_v53   ;;  %v44_v37 = vsub.f32 1.0, %v40_v29 }
 0x14e   :  { %322 = vperm.xlu1 %1920, %v142_v56   ;;  %808 = vperm.xlu0 %1925, %v142_v56  }
 0x14f   :  { %v2358_v47 = vmul.f32 -1e+30, %v44_v37 }
 0x155   :  { %1921 = vset.pattern.permute.xlu2 %v2123_v22  ;;  %v2330_v22 = vperm.slane %v166_v61, 7 }
 0x156   :  { %1923 = vset.pattern.permute.xlu1 %v2122_v21  ;;  %646 = vperm.xlu2 %1921, %v142_v56  }
 0x157   :  { %970 = vperm.xlu1 %1923, %v142_v56   ;;  %1952 = vset.pattern.permute.xlu0 %v2124_v23 }
 0x15b   :  { %v635_v57 = vpop.permute.xlu2 %634 }
 0x15c   :  { %v650_v11 = vadd.f32 %v2317_v5, %v635_v57 }
 0x15e   :  { %1922 = vset.pattern.permute.xlu2 %v2125_v27  ;;  %v658_v21 = vmul.f32 0.2, %v650_v11  ;;  %vm654_vm5 = vcmp.gt.f32.partialorder %v650_v11, 0.0 }
 0x15f   :  { %1924 = vset.pattern.permute.xlu1 %v2128_v34  ;;  %484 = vperm.xlu2 %1922, %v142_v56   ;;  %v2349_v34 = vperm.slane %v166_v61, 6 }
 0x160   :  { %1294 = vperm.xlu1 %1924, %v142_v56   ;;  %v662_v27 = vsel %vm654_vm5, %v650_v11, %v658_v21 }
 0x161   :  { %v2347_v32 = vadd.f32 %v662_v27, %v2319_v8 }
 0x163   :  { %v670_v41 = vsel %vm211_vm3, %v2347_v32, -inf }
 0x164   :  { %v473_v58 = vpop.permute.xlu2 %472 }
 0x165   :  { %v488_v39 = vadd.f32 %v2344_v30, %v473_v58 }
 0x167   :  { %1926 = vset.pattern.permute.xlu2 %v2126_v28  ;;  %v496_v51 = vmul.f32 0.2, %v488_v39  ;;  %vm492_vm9 = vcmp.gt.f32.partialorder %v488_v39, 0.0 }
 0x168   :  { %1132 = vperm.xlu2 %1926, %v142_v56   ;;  %1953 = vset.pattern.permute.xlu1 %v2124_v23 }
 0x169   :  { %v500_v2 = vsel %vm492_vm9, %v488_v39, %v496_v51  ;;  %v41_v39 = vld [vmem:[%s3044_s1 + $0x10] sm:$0xff] }
 0x16e   :  { %v1283_v60 = vpop.permute.xlu2 %1282 }
 0x16f   :  { %v1298_v26 = vadd.f32 %v2330_v22, %v1283_v60 }
 0x170   :  { %1954 = vset.pattern.permute.xlu2 %v2124_v23 }
 0x171   :  { %v1306_v33 = vmul.f32 0.2, %v1298_v26  ;;  %vm1302_vm7 = vcmp.gt.f32.partialorder %v1298_v26, 0.0 }
 0x173   :  { %v2312_v0 = vpop.permute.xlu0 %958  ;;  %v1310_v45 = vsel %vm1302_vm7, %v1298_v26, %v1306_v33 }
 0x174   :  { %v173_v1 = vpop.permute.xlu1 %172  ;;  %v2365_v52 = vadd.f32 %v1310_v45, %v2319_v8  ;;  %v974_v61 = vadd.f32 %v2353_v40, %v2312_v0 }
 0x175   :  { %v191_v3 = vadd.f32 %v2307_v62, %v173_v1 }
 0x176   :  { %v1318_v63 = vsel %vm211_vm3, %v2365_v52, -inf  ;;  %v982_v11 = vmul.f32 0.2, %v974_v61  ;;  %vm978_vm12 = vcmp.gt.f32.partialorder %v974_v61, 0.0 }
 0x177   :  { %vm195_vm2 = vcmp.gt.f32.partialorder %v191_v3, 0.0  ;;  %v199_v6 = vmul.f32 0.2, %v191_v3 }
 0x178   :  { %v797_v7 = vpop.permute.xlu2 %796  ;;  %v986_v21 = vsel %vm978_vm12, %v974_v61, %v982_v11 }
 0x179   :  { %v812_v9 = vadd.f32 %v2315_v4, %v797_v7  ;;  %v203_v10 = vsel %vm195_vm2, %v191_v3, %v199_v6  ;;  %v2401_v29 = vadd.f32 %v986_v21, %v2319_v8 }
 0x17a   :  { %v2324_v12 = vadd.f32 %v203_v10, %v2319_v8  ;;  %v2387_v10 = vadd.f32 %v500_v2, %v2319_v8 }
 0x17b   :  { %v820_v13 = vmul.f32 0.2, %v812_v9  ;;  %vm816_vm4 = vcmp.gt.f32.partialorder %v812_v9, 0.0 }
 0x17c   :  { %v212_v14 = vsel %vm211_vm3, %v2324_v12, -inf }
 0x17d   :  { %v1121_v15 = vpop.permute.xlu0 %1120  ;;  %v311_v17 = vpop.permute.xlu1 %310  ;;  %213 = vmax.xlane.f32.xlu0 %v212_v14  ;;  %v824_v20 = vsel %vm816_vm4, %v812_v9, %v820_v13 }
 0x17e   :  { %v2333_v23 = vadd.f32 %v824_v20, %v2319_v8  ;;  %v326_v24 = vadd.f32 %v2328_v18, %v311_v17  ;;  %v1136_v43 = vadd.f32 %v2349_v34, %v1121_v15  ;;  %v508_v15 = vsel %vm211_vm3, %v2387_v10, -inf }
 0x180   :  { %v832_v28 = vsel %vm211_vm3, %v2333_v23, -inf  ;;  %v334_v31 = vmul.f32 0.2, %v326_v24  ;;  %vm330_vm6 = vcmp.gt.f32.partialorder %v326_v24, 0.0  ;;  %v1144_v54 = vmul.f32 0.2, %v1136_v43 }
 0x181   :  { %v2336_v25 = vpop.permute.xlu2 %476  ;;  %vm1140_vm11 = vcmp.gt.f32.partialorder %v1136_v43, 0.0 }
 0x182   :  { %v338_v42 = vsel %vm330_vm6, %v326_v24, %v334_v31  ;;  %v1148_v6 = vsel %vm1140_vm11, %v1136_v43, %v1144_v54  ;;  %v489_v37 = vadd.f32 %v2344_v30, %v2336_v25 }
 0x183   :  { %v2362_v49 = vadd.f32 %v338_v42, %v2319_v8  ;;  %v2390_v0 = vadd.f32 %v1148_v6, %v2319_v8 }
 0x184   :  { %vm493_vm0 = vcmp.gt.f32.partialorder %v489_v37, 0.0 }
 0x185   :  { %833 = vmax.xlane.f32.xlu0 %v832_v28  ;;  %v346_v57 = vsel %vm211_vm3, %v2362_v49, -inf  ;;  %v1156_v20 = vsel %vm211_vm3, %v2390_v0, -inf }
 0x187   :  { %v315_v35 = vpop.permute.xlu0 %314  ;;  %v639_v36 = vpop.permute.xlu1 %638 }
 0x188   :  { %v327_v38 = vadd.f32 %v2328_v18, %v315_v35  ;;  %v651_v17 = vadd.f32 %v2317_v5, %v639_v36 }
 0x18a   :  { %vm331_vm8 = vcmp.gt.f32.partialorder %v327_v38, 0.0  ;;  %v335_v44 = vmul.f32 0.2, %v327_v38  ;;  %671 = vmax.xlane.f32.xlu1 %v670_v41  ;;  %v659_v31 = vmul.f32 0.2, %v651_v17  ;;  %vm655_vm14 = vcmp.gt.f32.partialorder %v651_v17, 0.0 }
 0x18b   :  { %v963_v46 = vpop.permute.xlu2 %962 }
 0x18c   :  { %v975_v48 = vadd.f32 %v2353_v40, %v963_v46  ;;  %v339_v50 = vsel %vm331_vm8, %v327_v38, %v335_v44  ;;  %v994_v38 = vsel %vm211_vm3, %v2401_v29, -inf  ;;  %v663_v42 = vsel %vm655_vm14, %v651_v17, %v659_v31 }
 0x18d   :  { %v2368_v53 = vadd.f32 %v339_v50, %v2358_v47  ;;  %v45_v46 = vsub.f32 1.0, %v41_v39  ;;  %v2418_v51 = vadd.f32 %v663_v42, %v2358_v47 }
 0x18e   :  { %v983_v55 = vmul.f32 0.2, %v975_v48  ;;  %vm979_vm10 = vcmp.gt.f32.partialorder %v975_v48, 0.0 }
 0x18f   :  { %v349_v56 = vsel %vm211_vm3, %v2368_v53, -inf  ;;  %v673_v61 = vsel %vm211_vm3, %v2418_v51, -inf }
 0x190   :  { %v2374_v58 = vpop.permute.xlu0 %1286  ;;  %350 = vmax.xlane.f32.xlu0 %v349_v56  ;;  %v987_v60 = vsel %vm979_vm10, %v975_v48, %v983_v55  ;;  %v497_v48 = vmul.f32 0.2, %v489_v37 }
 0x191   :  { %347 = vmax.xlane.f32.xlu2 %v346_v57  ;;  %v178_v1 = vpop.permute.xlu1 %177  ;;  %v2382_v7 = vadd.f32 %v987_v60, %v2358_v47  ;;  %v2423_v60 = vmul.f32 -1e+30, %v45_v46  ;;  %v1299_v2 = vadd.f32 %v2330_v22, %v2374_v58 }
 0x192   :  { %1319 = vmax.xlane.f32.xlu1 %v1318_v63  ;;  %v192_v3 = vadd.f32 %v2307_v62, %v178_v1  ;;  %v501_v1 = vsel %vm493_vm0, %v489_v37, %v497_v48 }
 0x193   :  { %v997_v14 = vsel %vm211_vm3, %v2382_v7, -inf  ;;  %vm1303_vm5 = vcmp.gt.f32.partialorder %v1299_v2, 0.0 }
 0x194   :  { %v2384_v9 = vpop.permute.xlu2 %642  ;;  %v200_v13 = vmul.f32 0.2, %v192_v3  ;;  %vm196_vm13 = vcmp.gt.f32.partialorder %v192_v3, 0.0 }
 0x196   :  { %v204_v27 = vsel %vm196_vm13, %v192_v3, %v200_v13 }
 0x197   :  { %v2404_v33 = vadd.f32 %v204_v27, %v2358_v47 }
 0x198   :  { %998 = vmax.xlane.f32.xlu0 %v997_v14  ;;  %v2437_v14 = vadd.f32 %v501_v1, %v2358_v47 }
 0x199   :  { %509 = vmax.xlane.f32.xlu2 %v508_v15  ;;  %v215_v41 = vsel %vm211_vm3, %v2404_v33, -inf  ;;  %v1307_v15 = vmul.f32 0.2, %v1299_v2 }
 0x19a   :  { %1157 = vmax.xlane.f32.xlu1 %v1156_v20  ;;  %v183_v24 = vpop.permute.xlu0 %182  ;;  %v801_v26 = vpop.permute.xlu1 %800  ;;  %v511_v27 = vsel %vm211_vm3, %v2437_v14, -inf }
 0x19b   :  { %v813_v28 = vadd.f32 %v2315_v4, %v801_v26  ;;  %v193_v43 = vadd.f32 %v2307_v62, %v183_v24 }
 0x19d   :  { %v821_v35 = vmul.f32 0.2, %v813_v28  ;;  %vm817_vm15 = vcmp.gt.f32.partialorder %v813_v28, 0.0  ;;  %v201_v55 = vmul.f32 0.2, %v193_v43  ;;  %vm197_vm4 = vcmp.gt.f32.partialorder %v193_v43, 0.0 }
 0x19e   :  { %v967_v36 = vpop.permute.xlu2 %966 }
 0x19f   :  { %v825_v44 = vsel %vm817_vm15, %v813_v28, %v821_v35  ;;  %v205_v11 = vsel %vm197_vm4, %v193_v43, %v201_v55  ;;  %v976_v37 = vadd.f32 %v2353_v40, %v967_v36 }
 0x1a0   :  { %v2421_v54 = vadd.f32 %v825_v44, %v2358_v47  ;;  %v2440_v58 = vadd.f32 %v205_v11, %v2423_v60 }
 0x1a1   :  { %995 = vmax.xlane.f32.xlu2 %v994_v38  ;;  %v984_v48 = vmul.f32 0.2, %v976_v37  ;;  %vm980_vm10 = vcmp.gt.f32.partialorder %v976_v37, 0.0 }
 0x1a2   :  { %216 = vmax.xlane.f32.xlu1 %v215_v41  ;;  %v835_v3 = vsel %vm211_vm3, %v2421_v54, -inf  ;;  %v218_v39 = vsel %vm211_vm3, %v2440_v58, -inf  ;;  %v1311_v41 = vsel %vm1303_vm5, %v1299_v2, %v1307_v15 }
 0x1a3   :  { %v481_v45 = vpop.permute.xlu0 %480  ;;  %v2455_v46 = vadd.f32 %v1311_v41, %v2358_v47 }
 0x1a4   :  { %v490_v25 = vadd.f32 %v2344_v30, %v481_v45  ;;  %v1125_v50 = vpop.permute.xlu1 %1124 }
 0x1a5   :  { %v1137_v38 = vadd.f32 %v2349_v34, %v1125_v50 }
 0x1a6   :  { %vm494_vm2 = vcmp.gt.f32.partialorder %v490_v25, 0.0  ;;  %v498_v56 = vmul.f32 0.2, %v490_v25 }
 0x1a7   :  { %v805_v57 = vpop.permute.xlu2 %804  ;;  %v1145_v36 = vmul.f32 0.2, %v1137_v38  ;;  %vm1141_vm9 = vcmp.gt.f32.partialorder %v1137_v38, 0.0 }
 0x1a8   :  { %v502_v63 = vsel %vm494_vm2, %v490_v25, %v498_v56  ;;  %v814_v21 = vadd.f32 %v2315_v4, %v805_v57 }
 0x1a9   :  { %674 = vmax.xlane.f32.xlu2 %v673_v61  ;;  %v2432_v6 = vadd.f32 %v502_v63, %v2423_v60  ;;  %v652_v61 = vadd.f32 %v2317_v5, %v2384_v9  ;;  %v1321_v63 = vsel %vm211_vm3, %v2455_v46, -inf  ;;  %v1149_v11 = vsel %vm1141_vm9, %v1137_v38, %v1145_v36 }
 0x1aa   :  { %836 = vmax.xlane.f32.xlu1 %v835_v3  ;;  %v822_v42 = vmul.f32 0.2, %v814_v21  ;;  %vm818_vm8 = vcmp.gt.f32.partialorder %v814_v21, 0.0  ;;  %vm628_vm9 = vcmask 195712  }
 0x1ab   :  { %v514_v13 = vsel %vm211_vm3, %v2432_v6, -inf  ;;  %vm656_vm12 = vcmp.gt.f32.partialorder %v652_v61, 0.0 }
 0x1ac   :  { %515 = vmax.xlane.f32.xlu0 %v514_v13  ;;  %v826_v56 = vsel %vm818_vm8, %v814_v21, %v822_v42  ;;  %v988_v13 = vsel %vm980_vm10, %v976_v37, %v984_v48  ;;  %vm466_vm8 = vcmask 130112   ;;  %vm790_vm10 = vcmask 261312  }
 0x1ad   :  { %v1291_v17 = vpop.permute.xlu0 %1290  ;;  %v319_v20 = vpop.permute.xlu1 %318  ;;  %v2470_v3 = vadd.f32 %v826_v56, %v2423_v60  ;;  %v2476_v9 = vadd.f32 %v988_v13, %v2423_v60 }
 0x1ae   :  { %v1300_v24 = vadd.f32 %v2330_v22, %v1291_v17  ;;  %v328_v26 = vadd.f32 %v2328_v18, %v319_v20  ;;  %v660_v17 = vmul.f32 0.2, %v652_v61  ;;  %v2473_v20 = vadd.f32 %v1149_v11, %v2358_v47 }
 0x1af   :  { %v838_v21 = vsel %vm211_vm3, %v2470_v3, -inf  ;;  %v1000_v37 = vsel %vm211_vm3, %v2476_v9, -inf }
 0x1b0   :  { %vm1304_vm6 = vcmp.gt.f32.partialorder %v1300_v24, 0.0  ;;  %v1308_v28 = vmul.f32 0.2, %v1300_v24  ;;  %vm332_vm7 = vcmp.gt.f32.partialorder %v328_v26, 0.0  ;;  %v336_v31 = vmul.f32 0.2, %v328_v26  ;;  %v647_v35 = vpop.permute.xlu2 %646 }
 0x1b1   :  { %512 = vmax.xlane.f32.xlu2 %v511_v27  ;;  %v664_v38 = vsel %vm656_vm12, %v652_v61, %v660_v17  ;;  %v653_v41 = vadd.f32 %v2317_v5, %v647_v35  ;;  %vm1114_vm12 = vcmask 392512  }
 0x1b2   :  { %219 = vmax.xlane.f32.xlu1 %v218_v39  ;;  %v1312_v43 = vsel %vm1304_vm6, %v1300_v24, %v1308_v28  ;;  %v340_v44 = vsel %vm332_vm7, %v328_v26, %v336_v31  ;;  %v42_v24 = vld [vmem:[%s3044_s1 + $0x18] sm:$0xff]  ;;  %v1159_v31 = vsel %vm211_vm3, %v2473_v20, -inf  ;;  %s2130_s1 = smov 80   ;;  %vm304_vm7 = vcmask 64512  }
 0x1b3   :  { %v2452_v45 = vadd.f32 %v1312_v43, %v2423_v60  ;;  %v2460_v50 = vadd.f32 %v340_v44, %v2423_v60  ;;  %v46_v39 = vsub.f32 1.0, %v42_v24  ;;  %v661_v5 = vmul.f32 0.2, %v653_v41 }
 0x1b4   :  { %vm657_vm0 = vcmp.gt.f32.partialorder %v653_v41, 0.0 }
 0x1b5   :  { %v1324_v25 = vsel %vm211_vm3, %v2452_v45, -inf  ;;  %v352_v2 = vsel %vm211_vm3, %v2460_v50, -inf  ;;  %v2497_v56 = vmul.f32 -1e+30, %v46_v39  ;;  %v665_v24 = vsel %vm657_vm0, %v653_v41, %v661_v5 }
 0x1b6   :  { %v1129_v55 = vpop.permute.xlu1 %1128  ;;  %1325 = vmax.xlane.f32.xlu0 %v1324_v25  ;;  %vm1497_vm0 = vcmask 31744  }
 0x1b7   :  { %v1138_v57 = vadd.f32 %v2349_v34, %v1129_v55  ;;  %v188_v26 = vpop.permute.xlu0 %187  ;;  %v2495_v55 = vadd.f32 %v664_v38, %v2423_v60 }
 0x1b8   :  { %v194_v42 = vadd.f32 %v2307_v62, %v188_v26 }
 0x1b9   :  { %1322 = vmax.xlane.f32.xlu2 %v1321_v63  ;;  %v485_v1 = vpop.permute.xlu2 %484  ;;  %v1146_v15 = vmul.f32 0.2, %v1138_v57  ;;  %vm1142_vm11 = vcmp.gt.f32.partialorder %v1138_v57, 0.0 }
 0x1ba   :  { %353 = vmax.xlane.f32.xlu1 %v352_v2  ;;  %v202_v35 = vmul.f32 0.2, %v194_v42  ;;  %vm198_vm14 = vcmp.gt.f32.partialorder %v194_v42, 0.0  ;;  %v491_v17 = vadd.f32 %v2344_v30, %v485_v1 }
 0x1bb   :  { %v1150_v27 = vsel %vm1142_vm11, %v1138_v57, %v1146_v15  ;;  %vm952_vm11 = vcmask 326912  }
 0x1bc   :  { %v2491_v44 = vadd.f32 %v1150_v27, %v2423_v60  ;;  %v206_v15 = vsel %vm198_vm14, %v194_v42, %v202_v35  ;;  %vm495_vm4 = vcmp.gt.f32.partialorder %v491_v17, 0.0  ;;  %vm1438_vm14 = vcmask 523712  }
 0x1bd   :  { %v2514_v26 = vadd.f32 %v206_v15, %v2497_v56 }
 0x1be   :  { %839 = vmax.xlane.f32.xlu0 %v838_v21  ;;  %v1162_v62 = vsel %vm211_vm3, %v2491_v44, -inf }
 0x1bf   :  { %v221_v30 = vsel %vm211_vm3, %v2514_v26, -inf }
 0x1c0   :  { %v323_v28 = vpop.permute.xlu1 %322 }
 0x1c1   :  { %v329_v43 = vadd.f32 %v2328_v18, %v323_v28  ;;  %1160 = vmax.xlane.f32.xlu2 %v1159_v31  ;;  %v2519_v31 = vadd.f32 %v665_v24, %v2497_v56 }
 0x1c2   :  { %1001 = vmax.xlane.f32.xlu1 %v1000_v37  ;;  %v1133_v48 = vpop.permute.xlu2 %1132  ;;  %v499_v37 = vmul.f32 0.2, %v491_v17 }
 0x1c3   :  { %vm333_vm13 = vcmp.gt.f32.partialorder %v329_v43, 0.0  ;;  %v337_v36 = vmul.f32 0.2, %v329_v43  ;;  %v1139_v25 = vadd.f32 %v2349_v34, %v1133_v48  ;;  %v676_v34 = vsel %vm211_vm3, %v2495_v55, -inf }
 0x1c4   :  { %v503_v39 = vsel %vm495_vm4, %v491_v17, %v499_v37 }
 0x1c5   :  { %v341_v18 = vsel %vm333_vm13, %v329_v43, %v337_v36  ;;  %v1147_v57 = vmul.f32 0.2, %v1139_v25  ;;  %vm1143_vm15 = vcmp.gt.f32.partialorder %v1139_v25, 0.0  ;;  %v2530_v48 = vadd.f32 %v503_v39, %v2497_v56  ;;  %v809_v36 = vpop.permute.xlu0 %808 }
 0x1c6   :  { %1163 = vmax.xlane.f32.xlu0 %v1162_v62  ;;  %v2502_v61 = vadd.f32 %v341_v18, %v2497_v56  ;;  %v815_v5 = vadd.f32 %v2315_v4, %v809_v36  ;;  %vm1276_vm13 = vcmask 458112  }
 0x1c7   :  { %v1151_v2 = vsel %vm1143_vm15, %v1139_v25, %v1147_v57  ;;  %v517_v35 = vsel %vm211_vm3, %v2530_v48, -inf  ;;  %vm1510_vm15 = vcmask 1043456  }
 0x1c8   :  { %v355_v63 = vsel %vm211_vm3, %v2502_v61, -inf  ;;  %v2509_v13 = vadd.f32 %v1151_v2, %v2497_v56  ;;  %v823_v18 = vmul.f32 0.2, %v815_v5  ;;  %vm819_vm6 = vcmp.gt.f32.partialorder %v815_v5, 0.0 }
 0x1c9   :  { %v971_v11 = vpop.permute.xlu1 %970  ;;  %677 = vmax.xlane.f32.xlu2 %v676_v34 }
 0x1ca   :  { %v977_v21 = vadd.f32 %v2353_v40, %v971_v11  ;;  %356 = vmax.xlane.f32.xlu1 %v355_v63  ;;  %v1165_v28 = vsel %vm211_vm3, %v2509_v13, -inf  ;;  %v679_v40 = vsel %vm211_vm3, %v2519_v31, -inf  ;;  %v827_v34 = vsel %vm819_vm6, %v815_v5, %v823_v18 }
 0x1cb   :  { %v2543_v63 = vadd.f32 %v827_v34, %v2497_v56 }
 0x1cc   :  { %v985_v27 = vmul.f32 0.2, %v977_v21  ;;  %vm981_vm2 = vcmp.gt.f32.partialorder %v977_v21, 0.0 }
 0x1cd   :  { %v841_v4 = vsel %vm211_vm3, %v2543_v63, -inf }
 0x1ce   :  { %1166 = vmax.xlane.f32.xlu0 %v1165_v28  ;;  %v989_v1 = vsel %vm981_vm2, %v977_v21, %v985_v27 }
 0x1cf   :  { %v2527_v42 = vadd.f32 %v989_v1, %v2497_v56 }
 0x1d1   :  { %222 = vmax.xlane.f32.xlu2 %v221_v30  ;;  %v1003_v25 = vsel %vm211_vm3, %v2527_v42, -inf }
 0x1d2   :  { %680 = vmax.xlane.f32.xlu1 %v679_v40  ;;  %v1295_v38 = vpop.permute.xlu1 %1294 }
 0x1d3   :  { %v1301_v41 = vadd.f32 %v2330_v22, %v1295_v38 }
 0x1d5   :  { %v1309_v43 = vmul.f32 0.2, %v1301_v41  ;;  %vm1305_vm5 = vcmp.gt.f32.partialorder %v1301_v41, 0.0 }
 0x1d7   :  { %v1313_v62 = vsel %vm1305_vm5, %v1301_v41, %v1309_v43 }
 0x1d8   :  { %v2538_v22 = vadd.f32 %v1313_v62, %v2497_v56 }
 0x1d9   :  { %1004 = vmax.xlane.f32.xlu2 %v1003_v25 }
 0x1da   :  { %518 = vmax.xlane.f32.xlu1 %v517_v35  ;;  %v1327_v57 = vsel %vm211_vm3, %v2538_v22, -inf }
 0x1e1   :  { %1328 = vmax.xlane.f32.xlu2 %v1327_v57 }
 0x1e9   :  { %842 = vmax.xlane.f32.xlu2 %v841_v4 }
 0x1f0   :  { %v214_v2 = vpop.xlane.xlu0 %213 }
 0x1f1   :  { %v224_v11 = vsub.f32 %v2324_v12, %v214_v2 }
 0x1f3   :  { %v228_v15 = vmul.f32 1.442695, %v224_v11 }
 0x1f5   :  { %1957 = vpow2.f32 %v228_v15 }
 0x1f8   :  { %v834_v21 = vpop.xlane.xlu0 %833 }
 0x1f9   :  { %v844_v25 = vsub.f32 %v2333_v23, %v834_v21 }
 0x1fb   :  { %v2548_v17 = vpop.eup %1957 }
 0x1fc   :  { %v236_v24 = vsel %vm211_vm3, %v2548_v17, 0.0 }
 0x1fd   :  { %v672_v27 = vpop.xlane.xlu1 %671  ;;  %237 = vadd.xlane.f32.xlu2 %v236_v24 }
 0x1fe   :  { %v682_v28 = vsub.f32 %v2347_v32, %v672_v27 }
 0x200   :  { %v686_v37 = vmul.f32 1.442695, %v682_v28 }
 0x202   :  { %1959 = vpow2.f32 %v686_v37 }
 0x203   :  { %v351_v30 = vpop.xlane.xlu0 %350 }
 0x204   :  { %v348_v40 = vpop.xlane.xlu2 %347  ;;  %v359_v1 = vsub.f32 %v2368_v53, %v351_v30  ;;  %v848_v53 = vmul.f32 1.442695, %v844_v25 }
 0x205   :  { %v358_v12 = vsub.f32 %v2362_v49, %v348_v40  ;;  %v1320_v38 = vpop.xlane.xlu1 %1319 }
 0x206   :  { %v1330_v39 = vsub.f32 %v2365_v52, %v1320_v38  ;;  %v364_v41 = vmul.f32 1.442695, %v359_v1 }
 0x207   :  { %v362_v43 = vmul.f32 1.442695, %v358_v12 }
 0x208   :  { %v2556_v36 = vpop.eup %1959  ;;  %v1334_v5 = vmul.f32 1.442695, %v1330_v39  ;;  %1961 = vpow2.f32 %v364_v41 }
 0x209   :  { %1963 = vpow2.f32 %v362_v43  ;;  %v694_v32 = vsel %vm211_vm3, %v2556_v36, 0.0 }
 0x20a   :  { %1965 = vpow2.f32 %v1334_v5  ;;  %695 = vadd.xlane.f32.xlu2 %v694_v32 }
 0x20b   :  { %1967 = vpow2.f32 %v848_v53 }
 0x20c   :  { %v510_v35 = vpop.xlane.xlu2 %509 }
 0x20d   :  { %v520_v49 = vsub.f32 %v2387_v10, %v510_v35  ;;  %v1158_v1 = vpop.xlane.xlu1 %1157 }
 0x20e   :  { %v2562_v62 = vpop.eup %1961  ;;  %v1168_v41 = vsub.f32 %v2390_v0, %v1158_v1 }
 0x20f   :  { %v2564_v52 = vpop.eup %1963  ;;  %v524_v18 = vmul.f32 1.442695, %v520_v49  ;;  %v373_v23 = vsel %vm211_vm3, %v2562_v62, 0.0 }
 0x210   :  { %v2568_v57 = vpop.eup %1965  ;;  %v370_v34 = vsel %vm211_vm3, %v2564_v52, 0.0  ;;  %374 = vadd.xlane.f32.xlu0 %v373_v23  ;;  %v1172_v25 = vmul.f32 1.442695, %v1168_v41 }
 0x211   :  { %1969 = vpow2.f32 %v524_v18  ;;  %371 = vadd.xlane.f32.xlu1 %v370_v34  ;;  %v1342_v10 = vsel %vm211_vm3, %v2568_v57, 0.0  ;;  %v2575_v11 = vpop.eup %1967 }
 0x212   :  { %1343 = vadd.xlane.f32.xlu2 %v1342_v10  ;;  %v856_v27 = vsel %vm211_vm3, %v2575_v11, 0.0 }
 0x214   :  { %v996_v4 = vpop.xlane.xlu2 %995 }
 0x215   :  { %v1006_v2 = vsub.f32 %v2401_v29, %v996_v4  ;;  %v999_v4 = vpop.xlane.xlu0 %998 }
 0x217   :  { %v2577_v15 = vpop.eup %1969  ;;  %v1010_v21 = vmul.f32 1.442695, %v1006_v2 }
 0x218   :  { %v532_v24 = vsel %vm211_vm3, %v2577_v15, 0.0 }
 0x219   :  { %1971 = vpow2.f32 %v1010_v21  ;;  %533 = vadd.xlane.f32.xlu1 %v532_v24 }
 0x21a   :  { %857 = vadd.xlane.f32.xlu2 %v856_v27  ;;  %v1007_v27 = vsub.f32 %v2382_v7, %v999_v4 }
 0x21c   :  { %v675_v28 = vpop.xlane.xlu2 %674 }
 0x21d   :  { %v683_v37 = vsub.f32 %v2418_v51, %v675_v28 }
 0x21f   :  { %v2584_v30 = vpop.eup %1971  ;;  %v688_v29 = vmul.f32 1.442695, %v683_v37  ;;  %v516_v37 = vpop.xlane.xlu0 %515 }
 0x220   :  { %v1018_v40 = vsel %vm211_vm3, %v2584_v30, 0.0 }
 0x221   :  { %1973 = vpow2.f32 %v688_v29  ;;  %1019 = vadd.xlane.f32.xlu1 %v1018_v40  ;;  %v1012_v29 = vmul.f32 1.442695, %v1007_v27  ;;  %v522_v40 = vsub.f32 %v2432_v6, %v516_v37 }
 0x223   :  { %v528_v41 = vmul.f32 1.442695, %v522_v40 }
 0x224   :  { %v513_v12 = vpop.xlane.xlu2 %512 }
 0x225   :  { %v521_v38 = vsub.f32 %v2437_v14, %v513_v12  ;;  %v217_v14 = vpop.xlane.xlu1 %216 }
 0x226   :  { %v225_v2 = vsub.f32 %v2404_v33, %v217_v14 }
 0x227   :  { %v2589_v39 = vpop.eup %1973  ;;  %v526_v43 = vmul.f32 1.442695, %v521_v38 }
 0x228   :  { %v697_v51 = vsel %vm211_vm3, %v2589_v39, 0.0  ;;  %v230_v28 = vmul.f32 1.442695, %v225_v2 }
 0x229   :  { %1975 = vpow2.f32 %v526_v43  ;;  %698 = vadd.xlane.f32.xlu0 %v697_v51  ;;  %v2625_v43 = vpop.xlane.xlu0 %1325 }
 0x22a   :  { %1977 = vpow2.f32 %v1172_v25 }
 0x22b   :  { %1979 = vpow2.f32 %v230_v28 }
 0x22c   :  { %v2594_v5 = vpop.xlane.xlu2 %1322  ;;  %1981 = vpow2.f32 %v1012_v29 }
 0x22d   :  { %v837_v18 = vpop.xlane.xlu1 %836 }
 0x22e   :  { %v845_v28 = vsub.f32 %v2421_v54, %v837_v18 }
 0x22f   :  { %v2596_v32 = vpop.eup %1975 }
 0x230   :  { %v535_v53 = vsel %vm211_vm3, %v2596_v32, 0.0  ;;  %v2602_v0 = vpop.eup %1977 }
 0x231   :  { %536 = vadd.xlane.f32.xlu1 %v535_v53  ;;  %v1180_v49 = vsel %vm211_vm3, %v2602_v0, 0.0  ;;  %v2622_v38 = vpop.eup %1979 }
 0x232   :  { %1933 = vrot.lane.b32.xlu2 %v2241_v16, %s2121_s22  ;;  %v239_v51 = vsel %vm211_vm3, %v2622_v38, 0.0 }
 0x234   :  { %v1161_v35 = vpop.xlane.xlu2 %1160 }
 0x235   :  { %v220_v34 = vpop.xlane.xlu1 %219  ;;  %v1169_v2 = vsub.f32 %v2473_v20, %v1161_v35  ;;  %v850_v35 = vmul.f32 1.442695, %v845_v28 }
 0x237   :  { %v1174_v37 = vmul.f32 1.442695, %v1169_v2 }
 0x239   :  { %1181 = vadd.xlane.f32.xlu1 %v1180_v49 }
 0x23a   :  { %1938 = vrot.lane.b32.xlu2 %v2252_v19, %s2130_s1 }
 0x23c   :  { %v678_v23 = vpop.xlane.xlu2 %677 }
 0x23d   :  { %1928 = vrot.lane.b32.xlu0 %v2252_v19, %s2131_s11  ;;  %v354_v21 = vpop.xlane.xlu1 %353  ;;  %v226_v19 = vsub.f32 %v2440_v58, %v220_v34  ;;  %v2629_v58 = vpop.eup %1981 }
 0x23e   :  { %v360_v7 = vsub.f32 %v2460_v50, %v354_v21  ;;  %v1021_v53 = vsel %vm211_vm3, %v2629_v58, 0.0  ;;  %v684_v50 = vsub.f32 %v2495_v55, %v678_v23 }
 0x23f   :  { %v232_v1 = vmul.f32 1.442695, %v226_v19 }
 0x240   :  { %v366_v6 = vmul.f32 1.442695, %v360_v7 }
 0x241   :  { %1983 = vpow2.f32 %v232_v1 }
 0x242   :  { %1985 = vpow2.f32 %v528_v41 }
 0x243   :  { %1987 = vpow2.f32 %v366_v6 }
 0x244   :  { %v223_v10 = vpop.xlane.xlu2 %222 }
 0x245   :  { %v2618_v12 = vpop.xlane.xlu1 %1001  ;;  %v227_v25 = vsub.f32 %v2514_v26, %v223_v10  ;;  %v2642_v26 = vpop.xlane.xlu0 %839  ;;  %v690_v10 = vmul.f32 1.442695, %v684_v50 }
 0x247   :  { %v2634_v14 = vpop.eup %1983  ;;  %v234_v4 = vmul.f32 1.442695, %v227_v25 }
 0x248   :  { %v242_v21 = vsel %vm211_vm3, %v2634_v14, 0.0  ;;  %v2640_v27 = vpop.eup %1985 }
 0x249   :  { %1989 = vpow2.f32 %v234_v4  ;;  %v538_v55 = vsel %vm211_vm3, %v2640_v27, 0.0  ;;  %v2647_v23 = vpop.eup %1987 }
 0x24a   :  { %1991 = vpow2.f32 %v690_v10  ;;  %v376_v54 = vsel %vm211_vm3, %v2647_v23, 0.0 }
 0x24c   :  { %v2613_v24 = vpop.xlane.xlu2 %1004 }
 0x24d   :  { %v357_v49 = vpop.xlane.xlu1 %356  ;;  %v2657_v7 = vpop.xlane.xlu0 %1163 }
 0x24e   :  { %v361_v29 = vsub.f32 %v2502_v61, %v357_v49 }
 0x24f   :  { %v2653_v18 = vpop.eup %1989 }
 0x250   :  { %v368_v1 = vmul.f32 1.442695, %v361_v29  ;;  %v2655_v41 = vpop.eup %1991  ;;  %v245_v61 = vsel %vm211_vm3, %v2653_v18, 0.0 }
 0x251   :  { %v700_v50 = vsel %vm211_vm3, %v2655_v41, 0.0 }
 0x252   :  { %1943 = vrot.lane.b32.xlu1 %v2241_v16, %s2131_s11 }
 0x254   :  { %v2620_v33 = vpop.xlane.xlu2 %1328 }
 0x255   :  { %v681_v19 = vpop.xlane.xlu1 %680  ;;  %v2680_v28 = vpop.xlane.xlu0 %1166 }
 0x25c   :  { %v843_v34 = vpop.xlane.xlu2 %842 }
 0x25d   :  { %v847_v40 = vsub.f32 %v2543_v63, %v843_v34  ;;  %v519_v4 = vpop.xlane.xlu1 %518 }
 0x263   :  { %240 = vadd.xlane.f32.xlu2 %v239_v51  ;;  %v854_v51 = vmul.f32 1.442695, %v847_v40 }
 0x267   :  { %1022 = vadd.xlane.f32.xlu0 %v1021_v53  ;;  %v685_v53 = vsub.f32 %v2519_v31, %v681_v19 }
 0x269   :  { %v692_v2 = vmul.f32 1.442695, %v685_v53 }
 0x26b   :  { %243 = vadd.xlane.f32.xlu2 %v242_v21 }
 0x26f   :  { %539 = vadd.xlane.f32.xlu0 %v538_v55 }
 0x270   :  { %v238_v20 = vpop.xlane.xlu2 %237 }
 0x271   :  { %1993 = vrcp.f32 %v238_v20 }
 0x272   :  { %1995 = vpow2.f32 %v1174_v37  ;;  %v523_v37 = vsub.f32 %v2530_v48, %v519_v4 }
 0x273   :  { %377 = vadd.xlane.f32.xlu2 %v376_v54  ;;  %1997 = vpow2.f32 %v850_v35 }
 0x274   :  { %1999 = vpow2.f32 %v368_v1  ;;  %v530_v29 = vmul.f32 1.442695, %v523_v37  ;;  %v1331_v1 = vsub.f32 %v2455_v46, %v2594_v5  ;;  %v1008_v46 = vsub.f32 %v2476_v9, %v2618_v12 }
 0x275   :  { %2001 = vpow2.f32 %v854_v51  ;;  %v1332_v12 = vsub.f32 %v2452_v45, %v2625_v43  ;;  %v1170_v43 = vsub.f32 %v2491_v44, %v2657_v7 }
 0x276   :  { %2003 = vpow2.f32 %v692_v2 }
 0x277   :  { %v1994_v6 = vpop.eup %1993  ;;  %246 = vadd.xlane.f32.xlu0 %v245_v61 }
 0x278   :  { %v2661_v25 = vpop.eup %1995  ;;  %v252_v63 = vmul.f32 %v1994_v6, %v2548_v17 }
 0x279   :  { %v2668_v49 = vpop.eup %1997  ;;  %v1183_v34 = vsel %vm211_vm3, %v2661_v25, 0.0 }
 0x27a   :  { %1770 = vmatmul.msk.f32.vlgmr.msrb.gmra.mxu0 %vm211_vm3, %v252_v63  ;;  %v859_v31 = vsel %vm211_vm3, %v2668_v49, 0.0  ;;  %v2676_v17 = vpop.eup %1999  ;;  %v1336_v63 = vmul.f32 1.442695, %v1331_v1 }
 0x27b   :  { %701 = vadd.xlane.f32.xlu2 %v700_v50  ;;  %v2678_v10 = vpop.eup %2001  ;;  %v379_v55 = vsel %vm211_vm3, %v2676_v17, 0.0 }
 0x27c   :  { %1184 = vadd.xlane.f32.xlu1 %v1183_v34  ;;  %v865_v20 = vsel %vm211_vm3, %v2678_v10, 0.0  ;;  %v2689_v40 = vpop.eup %2003 }
 0x27d   :  { %v2672_v21 = vpop.xlane.xlu2 %695  ;;  %v703_v48 = vsel %vm211_vm3, %v2689_v40, 0.0 }
 0x27f   :  { %860 = vadd.xlane.f32.xlu0 %v859_v31  ;;  %v1014_v31 = vmul.f32 1.442695, %v1008_v46 }
 0x283   :  { %380 = vadd.xlane.f32.xlu2 %v379_v55  ;;  %v375_v54 = vpop.xlane.xlu0 %374  ;;  %v1338_v55 = vmul.f32 1.442695, %v1332_v12  ;;  %v1171_v12 = vsub.f32 %v2509_v13, %v2680_v28 }
 0x284   :  { %v372_v35 = vpop.xlane.xlu1 %371  ;;  %866 = vadd.xlane.f32.xlu1 %v865_v20 }
 0x285   :  { %2005 = vrcp.f32 %v372_v35  ;;  %v2687_v19 = vpop.xlane.xlu2 %1343 }
 0x286   :  { %2007 = vpow2.f32 %v530_v29 }
 0x287   :  { %2009 = vrcp.f32 %v375_v54 }
 0x28b   :  { %v2006_v51 = vpop.eup %2005  ;;  %704 = vadd.xlane.f32.xlu2 %v703_v48  ;;  %v1176_v48 = vmul.f32 1.442695, %v1170_v43 }
 0x28c   :  { %v534_v61 = vpop.xlane.xlu1 %533  ;;  %v386_v6 = vmul.f32 %v2006_v51, %v2564_v52  ;;  %v2699_v50 = vpop.eup %2007 }
 0x28d   :  { %2011 = vrcp.f32 %v534_v61  ;;  %v2696_v53 = vpop.xlane.xlu2 %857  ;;  %v2010_v34 = vpop.eup %2009  ;;  %v541_v5 = vsel %vm211_vm3, %v2699_v50, 0.0 }
 0x28e   :  { %1774 = vmatmul.msk.f32.vlgmr.msrb.gmra.mxu2 %vm211_vm3, %v386_v6  ;;  %2013 = vpow2.f32 %v1336_v63  ;;  %v387_v2 = vmul.f32 %v2010_v34, %v2562_v62  ;;  %v1009_v6 = vsub.f32 %v2527_v42, %v2613_v24  ;;  %v846_v63 = vsub.f32 %v2470_v3, %v2642_v26 }
 0x28f   :  { %2015 = vpow2.f32 %v1014_v31 }
 0x290   :  { %2017 = vpow2.f32 %v1338_v55  ;;  %v1016_v46 = vmul.f32 1.442695, %v1009_v6  ;;  %v1178_v55 = vmul.f32 1.442695, %v1171_v12 }
 0x293   :  { %v2012_v4 = vpop.eup %2011  ;;  %542 = vadd.xlane.f32.xlu2 %v541_v5  ;;  %1948 = vrot.lane.b32.xlu0 %v2241_v16, %s2130_s1  ;;  %v2720_v16 = vld [vmem:[%s3045_s5] ss:$0 sm:$0xff]  ;;  %s2132_s5 = smov 8  }
 0x294   :  { %v548_v52 = vmul.f32 %v2012_v4, %v2577_v15  ;;  %v2713_v9 = vpop.eup %2013  ;;  %v2724_v15 = vpop.xlane.xlu1 %1019  ;;  %v852_v4 = vmul.f32 1.442695, %v846_v63 }
 0x295   :  { %v2709_v37 = vpop.permute.xlu2 %1933  ;;  %v1345_v62 = vsel %vm211_vm3, %v2713_v9, 0.0  ;;  %v2728_v29 = vpop.eup %2015 }
 0x296   :  { %1775 = vmatmul.msk.f32.gmra.mxu2 %vm211_vm3, %v387_v2  ;;  %1778 = vmatmul.msk.f32.vlgmr.msra.gmra.mxu0 %vm211_vm3, %v548_v52  ;;  %v1024_v54 = vsel %vm211_vm3, %v2728_v29, 0.0  ;;  %v2736_v51 = vpop.eup %2017  ;;  %v1333_v52 = vsub.f32 %v2538_v22, %v2620_v33 }
 0x297   :  { %v1348_v44 = vsel %vm211_vm3, %v2736_v51, 0.0 }
 0x29b   :  { %1346 = vadd.xlane.f32.xlu2 %v1345_v62 }
 0x29c   :  { %v2738_v61 = vpop.xlane.xlu0 %698 }
 0x29d   :  { %v1939_v20 = vpop.permute.xlu2 %1938  ;;  %402 = vrot.lane.b32.xlu1 %v2720_v16, %s2118_s0 }
 0x29e   :  { %v1940_v35 = vunpack.i.l.bf16 %v1939_v20  ;;  %v1941_v45 = vunpack.i.h.bf16 %v1939_v20 }
 0x2a0   :  { %1239 = vmatpush.msrb.mxu0 %v1940_v35 }
 0x2a2   :  { %1240 = vmatpush.msrb.mxu0 %v1941_v45 }
 0x2a3   :  { %1025 = vadd.xlane.f32.xlu2 %v1024_v54 }
 0x2a4   :  { %v537_v1 = vpop.xlane.xlu1 %536 }
 0x2a5   :  { %2019 = vrcp.f32 %v537_v1  ;;  %888 = vrot.lane.b32.xlu1 %v2720_v16, %s2131_s11 }
 0x2a6   :  { %2021 = vpow2.f32 %v1176_v48 }
 0x2a7   :  { %2023 = vpow2.f32 %v1016_v46 }
 0x2a8   :  { %2025 = vpow2.f32 %v852_v4 }
 0x2ab   :  { %v2020_v7 = vpop.eup %2019  ;;  %1349 = vadd.xlane.f32.xlu2 %v1348_v44 }
 0x2ac   :  { %v549_v34 = vmul.f32 %v2020_v7, %v2596_v32  ;;  %v2750_v5 = vpop.eup %2021  ;;  %v1340_v32 = vmul.f32 1.442695, %v1333_v52  ;;  %v2764_v33 = vpop.xlane.xlu1 %1181  ;;  %v1894_v52 = vunpack.i.h.bf16 %v2304_v59 }
 0x2ad   :  { %1374 = vrot.lane.b32.xlu1 %v2720_v16, %s2121_s22  ;;  %v1186_v3 = vsel %vm211_vm3, %v2750_v5, 0.0  ;;  %v2756_v26 = vpop.eup %2023 }
 0x2ae   :  { %1779 = vmatmul.msk.f32.gmra.mxu0 %vm211_vm3, %v549_v34  ;;  %v2758_v31 = vpop.eup %2025  ;;  %2027 = vpow2.f32 %v1340_v32  ;;  %v1027_v22 = vsel %vm211_vm3, %v2756_v26, 0.0  ;;  %v1935_v32 = vunpack.i.l.bf16 %v2709_v37 }
 0x2af   :  { %v1929_v42 = vpop.permute.xlu0 %1928  ;;  %v862_v62 = vsel %vm211_vm3, %v2758_v31, 0.0  ;;  %2029 = vpow2.f32 %v1178_v55 }
 0x2b0   :  { %v1930_v24 = vunpack.i.l.bf16 %v1929_v42  ;;  %v1931_v2 = vunpack.i.h.bf16 %v1929_v42 }
 0x2b2   :  { %915 = vmatpush.msra.mxu1 %v1930_v24 }
 0x2b3   :  { %1187 = vadd.xlane.f32.xlu2 %v1186_v3 }
 0x2b4   :  { %916 = vmatpush.msra.mxu1 %v1931_v2  ;;  %v2768_v20 = vpop.eup %2027 }
 0x2b5   :  { %v1351_v35 = vsel %vm211_vm3, %v2768_v20, 0.0  ;;  %v2772_v45 = vpop.eup %2029 }
 0x2b6   :  { %v1189_v54 = vsel %vm211_vm3, %v2772_v45, 0.0 }
 0x2bb   :  { %1028 = vadd.xlane.f32.xlu2 %v1027_v22 }
 0x2bd   :  { %863 = vadd.xlane.f32.xlu0 %v862_v62 }
 0x2c3   :  { %1352 = vadd.xlane.f32.xlu2 %v1351_v35 }
 0x2c4   :  { %v1944_v13 = vpop.permute.xlu1 %1943 }
 0x2c5   :  { %v1945_v28 = vunpack.i.l.bf16 %v1944_v13  ;;  %v1946_v43 = vunpack.i.h.bf16 %v1944_v13 }
 0x2c7   :  { %917 = vmatpush.msra.mxu1 %v1945_v28 }
 0x2c9   :  { %918 = vmatpush.msra.mxu1 %v1946_v43 }
 0x2cb   :  { %1190 = vadd.xlane.f32.xlu2 %v1189_v54 }
 0x2d1   :  { %726 = vrot.lane.b32.xlu0 %v2720_v16, %s2119_s3 }
 0x2d6   :  { %v241_v1 = vpop.xlane.xlu2 %240 }
 0x2d7   :  { %2031 = vrcp.f32 %v241_v1 }
 0x2d8   :  { %2033 = vrcp.f32 %v2696_v53  ;;  %v1893_v53 = vunpack.i.l.bf16 %v2304_v59 }
 0x2d9   :  { %1212 = vrot.lane.b32.xlu0 %v2720_v16, %s2130_s1 }
 0x2da   :  { %v2780_v48 = vpop.xlane.xlu0 %1022 }
 0x2dd   :  { %v2032_v6 = vpop.eup %2031 }
 0x2de   :  { %v244_v44 = vpop.xlane.xlu2 %243  ;;  %v253_v7 = vmul.f32 %v2032_v6, %v2622_v38  ;;  %v2034_v34 = vpop.eup %2033 }
 0x2df   :  { %2035 = vrcp.f32 %v244_v44  ;;  %v872_v4 = vmul.f32 %v2034_v34, %v2575_v11 }
 0x2e0   :  { %1771 = vmatmul.msk.f32.vlgmr.msrb.gmra.mxu1 %vm211_vm3, %v253_v7 }
 0x2e2   :  { %v540_v63 = vpop.xlane.xlu0 %539 }
 0x2e3   :  { %2037 = vrcp.f32 %v540_v63  ;;  %564 = vrot.lane.b32.xlu2 %v2720_v16, %s2117_s20 }
 0x2e5   :  { %v2036_v46 = vpop.eup %2035 }
 0x2e6   :  { %v378_v42 = vpop.xlane.xlu2 %377  ;;  %v254_v24 = vmul.f32 %v2036_v46, %v2634_v14  ;;  %v1936_v14 = vunpack.i.h.bf16 %v2709_v37 }
 0x2e7   :  { %2039 = vrcp.f32 %v378_v42 }
 0x2e8   :  { %1772 = vmatmul.msk.f32.vlgmr.msra.gmra.mxu3 %vm211_vm3, %v254_v24  ;;  %1786 = vmatmul.msk.f32.vlgmr.msra.gmra.mxu1 %vm211_vm3, %v872_v4 }
 0x2e9   :  { %v2038_v38 = vpop.eup %2037  ;;  %1401 = vmatpush.msra.mxu3 %v1893_v53 }
 0x2ea   :  { %v247_v2 = vpop.xlane.xlu0 %246  ;;  %v550_v3 = vmul.f32 %v2038_v38, %v2640_v27 }
 0x2eb   :  { %1402 = vmatpush.msra.mxu3 %v1894_v52  ;;  %2041 = vrcp.f32 %v247_v2  ;;  %1050 = vrot.lane.b32.xlu2 %v2720_v16, %s2120_s21 }
 0x2ec   :  { %1780 = vmatmul.msk.f32.gmra.mxu0 %vm211_vm3, %v550_v3  ;;  %2043 = vrcp.f32 %v2672_v21 }
 0x2ed   :  { %v2040_v11 = vpop.eup %2039  ;;  %1403 = vmatpush.msra.mxu3 %v1935_v32 }
 0x2ee   :  { %v702_v12 = vpop.xlane.xlu2 %701  ;;  %v388_v59 = vmul.f32 %v2040_v11, %v2647_v23 }
 0x2ef   :  { %1404 = vmatpush.msra.mxu3 %v1936_v14  ;;  %v1185_v54 = vpop.xlane.xlu1 %1184 }
 0x2f0   :  { %1776 = vmatmul.msk.f32.gmra.mxu2 %vm211_vm3, %v388_v59 }
 0x2f1   :  { %v2042_v27 = vpop.eup %2041 }
 0x2f2   :  { %v861_v22 = vpop.xlane.xlu0 %860  ;;  %v255_v62 = vmul.f32 %v2042_v27, %v2653_v18  ;;  %v2044_v35 = vpop.eup %2043 }
 0x2f3   :  { %2045 = vrcp.f32 %v861_v22  ;;  %v710_v43 = vmul.f32 %v2044_v35, %v2556_v36 }
 0x2f4   :  { %1773 = vmatmul.msk.f32.gmra.mxu3 %vm211_vm3, %v255_v62 }
 0x2f6   :  { %v381_v55 = vpop.xlane.xlu2 %380 }
 0x2f7   :  { %2047 = vrcp.f32 %v381_v55  ;;  %v288_v37 = vpop.f32.mrf.mxu0  ;;  %v867_v46 = vpop.xlane.xlu1 %866 }
 0x2f8   :  { %v289_v13 = vadd.f32 %v2720_v16, %v288_v37  ;;  %2049 = vrcp.f32 %v2738_v61 }
 0x2f9   :  { %v2046_v28 = vpop.eup %2045  ;;  %2051 = vrcp.f32 %v2724_v15 }
 0x2fa   :  { %v300_v23 = vmax.f32 %v289_v13, 0.0  ;;  %v873_v21 = vmul.f32 %v2046_v28, %v2668_v49  ;;  %2053 = vrcp.f32 %v702_v12 }
 0x2fb   :  { %2055 = vrcp.f32 %v2780_v48 }
 0x2fc   :  { %305 = vst.msk [vmem:[#allocation2] sm:$0xff] %vm304_vm7, %v300_v23  ;;  %1782 = vmatmul.msk.f32.vlgmr.msrb.gmra.mxu3 %vm211_vm3, %v710_v43  ;;  %1787 = vmatmul.msk.f32.gmra.mxu1 %vm211_vm3, %v873_v21 }
 0x2fd   :  { %v2048_v18 = vpop.eup %2047 }
 0x2fe   :  { %v705_v1 = vpop.xlane.xlu2 %704  ;;  %v389_v6 = vmul.f32 %v2048_v18, %v2676_v17  ;;  %v2050_v61 = vpop.eup %2049 }
 0x2ff   :  { %v711_v36 = vmul.f32 %v2050_v61, %v2589_v39  ;;  %v2052_v49 = vpop.eup %2051 }
 0x300   :  { %1777 = vmatmul.msk.f32.gmra.mxu2 %vm211_vm3, %v389_v6  ;;  %v1034_v7 = vmul.f32 %v2052_v49, %v2584_v30  ;;  %v2054_v34 = vpop.eup %2053 }
 0x301   :  { %v712_v39 = vmul.f32 %v2054_v34, %v2655_v41  ;;  %v2056_v4 = vpop.eup %2055 }
 0x302   :  { %v1035_v24 = vmul.f32 %v2056_v4, %v2629_v58 }
 0x304   :  { %1783 = vmatmul.msk.f32.gmra.mxu3 %vm211_vm3, %v711_v36 }
 0x305   :  { %v1949_v44 = vpop.permute.xlu0 %1948 }
 0x306   :  { %v543_v63 = vpop.xlane.xlu2 %542  ;;  %v1950_v15 = vunpack.i.l.bf16 %v1949_v44  ;;  %v1951_v17 = vunpack.i.h.bf16 %v1949_v44 }
 0x307   :  { %2057 = vrcp.f32 %v543_v63 }
 0x308   :  { %1790 = vmatmul.msk.f32.vlgmr.msra.gmra.mxu2 %vm211_vm3, %v1034_v7  ;;  %1241 = vmatpush.msrb.mxu0 %v1950_v15  ;;  %2059 = vrcp.f32 %v705_v1 }
 0x309   :  { %2061 = vrcp.f32 %v2764_v33 }
 0x30a   :  { %1242 = vmatpush.msrb.mxu0 %v1951_v17  ;;  %2063 = vrcp.f32 %v2687_v19 }
 0x30b   :  { %2065 = vrcp.f32 %v1185_v54 }
 0x30c   :  { %1784 = vmatmul.msk.f32.gmra.mxu3 %vm211_vm3, %v712_v39 }
 0x30d   :  { %v2058_v48 = vpop.eup %2057 }
 0x30e   :  { %v1347_v30 = vpop.xlane.xlu2 %1346  ;;  %v551_v42 = vmul.f32 %v2058_v48, %v2699_v50  ;;  %v2060_v53 = vpop.eup %2059 }
 0x30f   :  { %v2824_v38 = vpop.permute.xlu1 %402  ;;  %v713_v2 = vmul.f32 %v2060_v53, %v2689_v40  ;;  %v2062_v33 = vpop.eup %2061 }
 0x310   :  { %1781 = vmatmul.msk.f32.gmra.mxu0 %vm211_vm3, %v551_v42  ;;  %1791 = vmatmul.msk.f32.gmra.mxu2 %vm211_vm3, %v1035_v24  ;;  %v1196_v58 = vmul.f32 %v2062_v33, %v2602_v0  ;;  %v2064_v32 = vpop.eup %2063 }
 0x311   :  { %v434_v41 = vpop.f32.mrf.mxu2  ;;  %v1358_v19 = vmul.f32 %v2064_v32, %v2568_v57  ;;  %v2066_v11 = vpop.eup %2065 }
 0x312   :  { %v435_v52 = vadd.f32 %v434_v41, %v2824_v38  ;;  %v1197_v0 = vmul.f32 %v2066_v11, %v2661_v25 }
 0x313   :  { %v596_v43 = vpop.f32.mrf.mxu0 }
 0x314   :  { %v446_v3 = vmax.f32 %v435_v52, 0.0  ;;  %1785 = vmatmul.msk.f32.gmra.mxu3 %vm211_vm3, %v713_v2 }
 0x316   :  { %v1026_v50 = vpop.xlane.xlu2 %1025  ;;  %454 = vrot.lane.b32.xlu2 %v446_v3, %s2132_s5 }
 0x317   :  { %2067 = vrcp.f32 %v1026_v50  ;;  %v2867_v34 = vpop.permute.xlu1 %888 }
 0x318   :  { %1794 = vmatmul.msk.f32.vlgmr.msrb.gmra.mxu0 %vm211_vm3, %v1196_v58  ;;  %2069 = vrcp.f32 %v1347_v30 }
 0x319   :  { %v437_v44 = vpop.f32.mrf.mxu2 }
 0x31c   :  { %1798 = vmatmul.msk.f32.vlgmr.msra.gmra.mxu3 %vm211_vm3, %v1358_v19 }
 0x31d   :  { %v2068_v40 = vpop.eup %2067 }
 0x31e   :  { %v1350_v14 = vpop.xlane.xlu2 %1349  ;;  %v1036_v12 = vmul.f32 %v2068_v40, %v2728_v29  ;;  %v2070_v59 = vpop.eup %2069 }
 0x31f   :  { %2071 = vrcp.f32 %v1350_v14  ;;  %v1359_v27 = vmul.f32 %v2070_v59, %v2713_v9 }
 0x320   :  { %1792 = vmatmul.msk.f32.gmra.mxu2 %vm211_vm3, %v1036_v12  ;;  %1795 = vmatmul.msk.f32.gmra.mxu0 %vm211_vm3, %v1197_v0 }
 0x324   :  { %1799 = vmatmul.msk.f32.gmra.mxu3 %vm211_vm3, %v1359_v27 }
 0x325   :  { %v2072_v22 = vpop.eup %2071 }
 0x326   :  { %v1188_v57 = vpop.xlane.xlu2 %1187  ;;  %v1360_v62 = vmul.f32 %v2072_v22, %v2736_v51 }
 0x327   :  { %2073 = vrcp.f32 %v1188_v57 }
 0x32b   :  { %v599_v1 = vpop.f32.mrf.mxu0 }
 0x32c   :  { %1800 = vmatmul.msk.f32.gmra.mxu3 %vm211_vm3, %v1360_v62 }
 0x32d   :  { %v2074_v29 = vpop.eup %2073 }
 0x32e   :  { %v1029_v55 = vpop.xlane.xlu2 %1028  ;;  %v1198_v25 = vmul.f32 %v2074_v29, %v2750_v5 }
 0x32f   :  { %2075 = vrcp.f32 %v1029_v55 }
 0x330   :  { %1796 = vmatmul.msk.f32.gmra.mxu0 %vm211_vm3, %v1198_v25  ;;  %v864_v35 = vpop.xlane.xlu0 %863 }
 0x331   :  { %2077 = vrcp.f32 %v864_v35 }
 0x332   :  { %2079 = vrcp.f32 %v867_v46 }
 0x335   :  { %v2076_v37 = vpop.eup %2075 }
 0x336   :  { %v1353_v9 = vpop.xlane.xlu2 %1352  ;;  %v1037_v13 = vmul.f32 %v2076_v37, %v2756_v26 }
 0x337   :  { %v2078_v28 = vpop.eup %2077  ;;  %2081 = vrcp.f32 %v1353_v9 }
 0x338   :  { %1793 = vmatmul.msk.f32.gmra.mxu2 %vm211_vm3, %v1037_v13  ;;  %v874_v51 = vmul.f32 %v2078_v28, %v2758_v31  ;;  %v2080_v23 = vpop.eup %2079 }
 0x339   :  { %v875_v54 = vmul.f32 %v2080_v23, %v2678_v10  ;;  %v438_v10 = vadd.f32 %v437_v44, %v2824_v38 }
 0x33a   :  { %1788 = vmatmul.msk.f32.gmra.mxu1 %vm211_vm3, %v874_v51 }
 0x33b   :  { %v447_v7 = vmax.f32 %v438_v10, 0.0 }
 0x33d   :  { %v2082_v5 = vpop.eup %2081 }
 0x33e   :  { %v1191_v21 = vpop.xlane.xlu2 %1190  ;;  %v1361_v18 = vmul.f32 %v2082_v5, %v2768_v20 }
 0x33f   :  { %2083 = vrcp.f32 %v1191_v21 }
 0x340   :  { %1801 = vmatmul.msk.f32.gmra.mxu3 %vm211_vm3, %v1361_v18 }
 0x342   :  { %1789 = vmatmul.msk.f32.gmra.mxu1 %vm211_vm3, %v875_v54 }
 0x343   :  { %v2884_v0 = vpop.permute.xlu0 %726 }
 0x345   :  { %v2084_v26 = vpop.eup %2083 }
 0x346   :  { %v2855_v6 = vpop.permute.xlu2 %564  ;;  %v1199_v31 = vmul.f32 %v2084_v26, %v2772_v45  ;;  %v1375_v26 = vpop.permute.xlu1 %1374 }
 0x347   :  { %v600_v61 = vadd.f32 %v599_v1, %v2855_v6  ;;  %v597_v36 = vadd.f32 %v596_v43, %v2855_v6 }
 0x348   :  { %1797 = vmatmul.msk.f32.gmra.mxu0 %vm211_vm3, %v1199_v31 }
 0x349   :  { %v609_v20 = vmax.f32 %v600_v61, 0.0  ;;  %v608_v49 = vmax.f32 %v597_v36, 0.0 }
 0x34b   :  { %618 = vrot.lane.b32.xlu1 %v609_v20, %s2133_s14  ;;  %616 = vrot.lane.b32.xlu0 %v608_v49, %s2133_s14  ;;  %v2892_v13 = vpop.permute.xlu0 %1212 }
 0x34e   :  { %v2870_v39 = vpop.permute.xlu2 %1050 }
 0x353   :  { %456 = vrot.lane.b32.xlu0 %v447_v7, %s2132_s5 }
 0x35d   :  { %v291_v45 = vpop.f32.mrf.mxu1 }
 0x35e   :  { %v292_v63 = vadd.f32 %v2720_v16, %v291_v45 }
 0x360   :  { %v301_v15 = vmax.f32 %v292_v63, 0.0 }
 0x362   :  { %306 = vst.msk [vmem:[#allocation2 + $0x8] sm:$0xff] %vm304_vm7, %v301_v15 }
 0x365   :  { %v920_v46 = vpop.f32.mrf.mxu1 }
 0x366   :  { %v921_v17 = vadd.f32 %v920_v46, %v2867_v34 }
 0x368   :  { %v932_v4 = vmax.f32 %v921_v17, 0.0 }
 0x369   :  { %v602_v48 = vpop.f32.mrf.mxu0 }
 0x36a   :  { %940 = vrot.lane.b32.xlu2 %v932_v4, %s2134_s15  ;;  %v603_v42 = vadd.f32 %v602_v48, %v2855_v6 }
 0x36b   :  { %v294_v30 = vpop.f32.mrf.mxu3 }
 0x36c   :  { %v295_v24 = vadd.f32 %v2720_v16, %v294_v30  ;;  %v610_v41 = vmax.f32 %v603_v42, 0.0 }
 0x36e   :  { %v302_v53 = vmax.f32 %v295_v24, 0.0 }
 0x370   :  { %307 = vst.msk [vmem:[#allocation2 + $0x10] sm:$0xff] %vm304_vm7, %v302_v53  ;;  %v455_v52 = vpop.permute.xlu2 %454 }
 0x371   :  { %467 = vst.msk [vmem:[#allocation2] sm:$0xff] %vm466_vm8, %v455_v52 }
 0x372   :  { %620 = vrot.lane.b32.xlu2 %v610_v41, %s2133_s14 }
 0x373   :  { %v440_v2 = vpop.f32.mrf.mxu2 }
 0x374   :  { %v441_v33 = vadd.f32 %v440_v2, %v2824_v38 }
 0x376   :  { %v448_v3 = vmax.f32 %v441_v33, 0.0 }
 0x377   :  { %v297_v58 = vpop.f32.mrf.mxu3 }
 0x378   :  { %458 = vrot.lane.b32.xlu1 %v448_v3, %s2132_s5  ;;  %v298_v50 = vadd.f32 %v2720_v16, %v297_v58 }
 0x379   :  { %v923_v32 = vpop.f32.mrf.mxu1 }
 0x37a   :  { %v303_v19 = vmax.f32 %v298_v50, 0.0  ;;  %v924_v11 = vadd.f32 %v923_v32, %v2867_v34 }
 0x37c   :  { %308 = vst.msk [vmem:[#allocation2 + $0x18] sm:$0xff] %vm304_vm7, %v303_v19  ;;  %v933_v40 = vmax.f32 %v924_v11, 0.0 }
 0x37e   :  { %942 = vrot.lane.b32.xlu0 %v933_v40, %s2134_s15 }
 0x37f   :  { %v758_v14 = vpop.f32.mrf.mxu3 }
 0x383   :  { %v443_v12 = vpop.f32.mrf.mxu2 }
 0x384   :  { %v444_v44 = vadd.f32 %v443_v12, %v2824_v38  ;;  %v759_v38 = vadd.f32 %v758_v14, %v2884_v0 }
 0x386   :  { %v449_v45 = vmax.f32 %v444_v44, 0.0  ;;  %v770_v52 = vmax.f32 %v759_v38, 0.0 }
 0x387   :  { %v761_v59 = vpop.f32.mrf.mxu3 }
 0x388   :  { %v762_v27 = vadd.f32 %v761_v59, %v2884_v0 }
 0x38a   :  { %v771_v57 = vmax.f32 %v762_v27, 0.0 }
 0x38b   :  { %v1082_v22 = vpop.f32.mrf.mxu2 }
 0x38c   :  { %v1083_v16 = vadd.f32 %v1082_v22, %v2870_v39  ;;  %780 = vrot.lane.b32.xlu2 %v771_v57, %s2135_s16 }
 0x38d   :  { %v605_v62 = vpop.f32.mrf.mxu0 }
 0x38e   :  { %v1094_v29 = vmax.f32 %v1083_v16, 0.0  ;;  %v606_v4 = vadd.f32 %v605_v62, %v2855_v6 }
 0x38f   :  { %v764_v55 = vpop.f32.mrf.mxu3 }
 0x390   :  { %1102 = vrot.lane.b32.xlu0 %v1094_v29, %s2136_s17  ;;  %v765_v25 = vadd.f32 %v764_v55, %v2884_v0  ;;  %v611_v42 = vmax.f32 %v606_v4, 0.0 }
 0x392   :  { %v772_v37 = vmax.f32 %v765_v25, 0.0 }
 0x393   :  { %v1085_v9 = vpop.f32.mrf.mxu2 }
 0x394   :  { %v1086_v11 = vadd.f32 %v1085_v9, %v2870_v39 }
 0x395   :  { %v1244_v35 = vpop.f32.mrf.mxu0 }
 0x396   :  { %v1245_v3 = vadd.f32 %v1244_v35, %v2892_v13  ;;  %v1095_v40 = vmax.f32 %v1086_v11, 0.0 }
 0x397   :  { %v2894_v28 = vpop.f32.mrf.mxu3 }
 0x398   :  { %782 = vrot.lane.b32.xlu0 %v772_v37, %s2135_s16  ;;  %v1256_v32 = vmax.f32 %v1245_v3, 0.0  ;;  %v768_v12 = vadd.f32 %v2894_v28, %v2884_v0  ;;  %v1454_v28 = vld [vmem:[%s3046_s6 + $0x38] sm:$0xff] }
 0x399   :  { %1475 = vmatpush.msrb.mxu1 %v1454_v28 }
 0x39a   :  { %v773_v59 = vmax.f32 %v768_v12, 0.0 }
 0x39d   :  { %v1247_v51 = vpop.f32.mrf.mxu0 }
 0x39e   :  { %v1248_v23 = vadd.f32 %v1247_v51, %v2892_v13 }
 0x39f   :  { %v1406_v18 = vpop.f32.mrf.mxu3 }
 0x3a0   :  { %v1257_v5 = vmax.f32 %v1248_v23, 0.0  ;;  %v1407_v1 = vadd.f32 %v1406_v18, %v1375_v26  ;;  %v1453_v23 = vld [vmem:[%s3046_s6 + $0x30] sm:$0xff] }
 0x3a1   :  { %1476 = vmatpush.msrb.mxu1 %v1453_v23  ;;  %v1449_v18 = vld [vmem:[%s3046_s6 + $0x10] sm:$0xff] }
 0x3a2   :  { %1266 = vrot.lane.b32.xlu2 %v1257_v5, %s2137_s18  ;;  %v1418_v36 = vmax.f32 %v1407_v1, 0.0  ;;  %v1452_v5 = vld [vmem:[%s3046_s6 + $0x28] sm:$0xff]  ;;  %v1447_v1 = vld [vmem:[%s3046_s6] sm:$0xff] }
 0x3a3   :  { %v1088_v43 = vpop.f32.mrf.mxu2  ;;  %1477 = vmatpush.msrb.mxu1 %v1452_v5 }
 0x3a4   :  { %v1089_v21 = vadd.f32 %v1088_v43, %v2870_v39  ;;  %v1451_v43 = vld [vmem:[%s3046_s6 + $0x20] sm:$0xff] }
 0x3a5   :  { %1478 = vmatpush.msrb.mxu1 %v1451_v43 }
 0x3a6   :  { %v1096_v54 = vmax.f32 %v1089_v21, 0.0  ;;  %v1450_v21 = vld [vmem:[%s3046_s6 + $0x18] sm:$0xff] }
 0x3a7   :  { %v1409_v49 = vpop.f32.mrf.mxu3  ;;  %1479 = vmatpush.msrb.mxu1 %v1450_v21 }
 0x3a8   :  { %v1410_v10 = vadd.f32 %v1409_v49, %v1375_v26 }
 0x3a9   :  { %1480 = vmatpush.msrb.mxu1 %v1449_v18 }
 0x3aa   :  { %1106 = vrot.lane.b32.xlu2 %v1096_v54, %s2136_s17  ;;  %v1419_v63 = vmax.f32 %v1410_v10, 0.0  ;;  %v1448_v54 = vld [vmem:[%s3046_s6 + $0x8] sm:$0xff] }
 0x3ab   :  { %1481 = vmatpush.msrb.mxu1 %v1448_v54 }
 0x3ad   :  { %v1250_v31 = vpop.f32.mrf.mxu0  ;;  %1482 = vmatpush.msrb.mxu1 %v1447_v1 }
 0x3ae   :  { %v1251_v61 = vadd.f32 %v1250_v31, %v2892_v13 }
 0x3af   :  { %v1412_v17 = vpop.f32.mrf.mxu3 }
 0x3b0   :  { %v1258_v20 = vmax.f32 %v1251_v61, 0.0  ;;  %v1413_v27 = vadd.f32 %v1412_v17, %v1375_v26 }
 0x3b2   :  { %1268 = vrot.lane.b32.xlu0 %v1258_v20, %s2137_s18  ;;  %1426 = vrot.lane.b32.xlu2 %v1418_v36, %s2138_s19  ;;  %v1420_v22 = vmax.f32 %v1413_v27, 0.0 }
 0x3b7   :  { %v926_v7 = vpop.f32.mrf.mxu1 }
 0x3b8   :  { %v927_v15 = vadd.f32 %v926_v7, %v2867_v34  ;;  %v1496_v7 = vld [vmem:[%s3047_s7] sm:$0xf] }
 0x3b9   :  { %1806 = vmatpush.msk.msrb.mxu2 %vm1510_vm15, %v1496_v7 }
 0x3ba   :  { %v934_v46 = vmax.f32 %v927_v15, 0.0  ;;  %1428 = vrot.lane.b32.xlu0 %v1419_v63, %s2138_s19  ;;  %460 = vrot.lane.b32.xlu2 %v449_v45, %s2132_s5 }
 0x3bb   :  { %v1091_v53 = vpop.f32.mrf.mxu2 }
 0x3bc   :  { %944 = vrot.lane.b32.xlu1 %v934_v46, %s2134_s15  ;;  %v1092_v33 = vadd.f32 %v1091_v53, %v2870_v39 }
 0x3bd   :  { %v617_v48 = vpop.permute.xlu0 %616  ;;  %v619_v58 = vpop.permute.xlu1 %618 }
 0x3be   :  { %629 = vst.msk [vmem:[#allocation2] sm:$0xff] %vm628_vm9, %v617_v48 }
 0x3bf   :  { %v929_v30 = vpop.f32.mrf.mxu1 }
 0x3c0   :  { %v930_v24 = vadd.f32 %v929_v30, %v2867_v34  ;;  %v1097_v34 = vmax.f32 %v1092_v33, 0.0 }
 0x3c2   :  { %v935_v41 = vmax.f32 %v930_v24, 0.0  ;;  %622 = vrot.lane.b32.xlu0 %v611_v42, %s2133_s14 }
 0x3c3   :  { %v1415_v2 = vpop.f32.mrf.mxu3 }
 0x3c4   :  { %778 = vrot.lane.b32.xlu1 %v770_v52, %s2135_s16  ;;  %946 = vrot.lane.b32.xlu2 %v935_v41, %s2134_s15  ;;  %v1416_v50 = vadd.f32 %v1415_v2, %v1375_v26  ;;  %v941_v14 = vpop.permute.xlu2 %940  ;;  %v1543_v52 = vld [vmem:[%s3048_s8] sm:$0x1] }
 0x3c5   :  { %v457_v6 = vpop.permute.xlu0 %456  ;;  %v1253_v16 = vpop.f32.mrf.mxu0 }
 0x3c6   :  { %468 = vst.msk [vmem:[#allocation2 + $0x8] sm:$0xff] %vm466_vm8, %v457_v6  ;;  %v1421_v19 = vmax.f32 %v1416_v50, 0.0  ;;  %v1254_v62 = vadd.f32 %v1253_v16, %v2892_v13 }
 0x3c7   :  { %630 = vst.msk [vmem:[#allocation2 + $0x8] sm:$0xff] %vm628_vm9, %v619_v58 }
 0x3c8   :  { %v1259_v29 = vmax.f32 %v1254_v62, 0.0 }
 0x3ca   :  { %1108 = vrot.lane.b32.xlu0 %v1097_v34, %s2136_s17 }
 0x3cc   :  { %1264 = vrot.lane.b32.xlu1 %v1256_v32, %s2137_s18  ;;  %1432 = vrot.lane.b32.xlu2 %v1421_v19, %s2138_s19  ;;  %v621_v57 = vpop.permute.xlu2 %620 }
 0x3d4   :  { %1104 = vrot.lane.b32.xlu1 %v1095_v40, %s2136_s17 }
 0x3dc   :  { %784 = vrot.lane.b32.xlu1 %v773_v59, %s2135_s16 }
 0x3e4   :  { %1430 = vrot.lane.b32.xlu1 %v1420_v22, %s2138_s19 }
 0x3e6   :  { %v781_v39 = vpop.permute.xlu2 %780 }
 0x3e7   :  { %792 = vst.msk [vmem:[#allocation2 + $0x8] sm:$0xff] %vm790_vm10, %v781_v39 }
 0x3ea   :  { %v459_v55 = vpop.permute.xlu1 %458 }
 0x3eb   :  { %469 = vst.msk [vmem:[#allocation2 + $0x10] sm:$0xff] %vm466_vm8, %v459_v55 }
 0x3ec   :  { %631 = vst.msk [vmem:[#allocation2 + $0x10] sm:$0xff] %vm628_vm9, %v621_v57  ;;  %1270 = vrot.lane.b32.xlu1 %v1259_v29, %s2137_s18 }
 0x3f0   :  { %v943_v0 = vpop.permute.xlu0 %942 }
 0x3f1   :  { %954 = vst.msk [vmem:[#allocation2 + $0x8] sm:$0xff] %vm952_vm11, %v943_v0 }
 0x3fc   :  { %v1267_v25 = vpop.permute.xlu2 %1266 }
 0x402   :  { %v1103_v35 = vpop.permute.xlu0 %1102 }
 0x404   :  { %v1107_v37 = vpop.permute.xlu2 %1106 }
 0x40a   :  { %v783_v9 = vpop.permute.xlu0 %782 }
 0x40b   :  { %793 = vst.msk [vmem:[#allocation2 + $0x10] sm:$0xff] %vm790_vm10, %v783_v9 }
 0x40c   :  { %v1427_v13 = vpop.permute.xlu2 %1426 }
 0x414   :  { %v461_v51 = vpop.permute.xlu2 %460 }
 0x415   :  { %470 = vst.msk [vmem:[#allocation2 + $0x18] sm:$0xff] %vm466_vm8, %v461_v51 }
 0x41e   :  { %v947_v63 = vpop.permute.xlu2 %946 }
 0x424   :  { %v1269_v26 = vpop.permute.xlu0 %1268 }
 0x426   :  { %v1433_v38 = vpop.permute.xlu2 %1432 }
 0x42c   :  { %v1429_v31 = vpop.permute.xlu0 %1428 }
 0x42e   :  { %v945_v61 = vpop.permute.xlu1 %944 }
 0x42f   :  { %955 = vst.msk [vmem:[#allocation2 + $0x10] sm:$0xff] %vm952_vm11, %v945_v61 }
 0x430   :  { %1117 = vst.msk [vmem:[#allocation2 + $0x10] sm:$0xff] %vm1114_vm12, %v1107_v37 }
 0x431   :  { %1279 = vst.msk [vmem:[#allocation2 + $0x10] sm:$0xff] %vm1276_vm13, %v1269_v26 }
 0x434   :  { %v623_v36 = vpop.permute.xlu0 %622 }
 0x435   :  { %632 = vst.msk [vmem:[#allocation2 + $0x18] sm:$0xff] %vm628_vm9, %v623_v36 }
 0x436   :  { %v779_v20 = vpop.permute.xlu1 %778 }
 0x437   :  { %791 = vst.msk [vmem:[#allocation2] sm:$0xff] %vm790_vm10, %v779_v20 }
 0x438   :  { %953 = vst.msk [vmem:[#allocation2] sm:$0xff] %vm952_vm11, %v941_v14 }
 0x439   :  { %1115 = vst.msk [vmem:[#allocation2] sm:$0xff] %vm1114_vm12, %v1103_v35 }
 0x43c   :  { %v1109_v15 = vpop.permute.xlu0 %1108 }
 0x43e   :  { %v1265_v49 = vpop.permute.xlu1 %1264 }
 0x43f   :  { %1277 = vst.msk [vmem:[#allocation2] sm:$0xff] %vm1276_vm13, %v1265_v49 }
 0x440   :  { %1439 = vst.msk [vmem:[#allocation2] sm:$0xff] %vm1438_vm14, %v1427_v13 }
 0x446   :  { %v1105_v44 = vpop.permute.xlu1 %1104 }
 0x447   :  { %1116 = vst.msk [vmem:[#allocation2 + $0x8] sm:$0xff] %vm1114_vm12, %v1105_v44  ;;  %v1443_v10 = vld [vmem:[#allocation2] sm:$0xff] }
 0x448   :  { %1278 = vst.msk [vmem:[#allocation2 + $0x8] sm:$0xff] %vm1276_vm13, %v1267_v25  ;;  %1802 = vmatmul.msk.f32.vlgmr.msrb.gmra.mxu1 %vm103_vm1, %v1443_v10 }
 0x449   :  { %1440 = vst.msk [vmem:[#allocation2 + $0x8] sm:$0xff] %vm1438_vm14, %v1429_v31 }
 0x44e   :  { %v785_v45 = vpop.permute.xlu1 %784 }
 0x44f   :  { %794 = vst.msk [vmem:[#allocation2 + $0x18] sm:$0xff] %vm790_vm10, %v785_v45 }
 0x450   :  { %956 = vst.msk [vmem:[#allocation2 + $0x18] sm:$0xff] %vm952_vm11, %v947_v63  ;;  %v1444_v46 = vld [vmem:[#allocation2 + $0x8] sm:$0xff] }
 0x451   :  { %1118 = vst.msk [vmem:[#allocation2 + $0x18] sm:$0xff] %vm1114_vm12, %v1109_v15  ;;  %1803 = vmatmul.msk.f32.gmra.mxu1 %vm103_vm1, %v1444_v46 }
 0x456   :  { %v1431_v17 = vpop.permute.xlu1 %1430 }
 0x457   :  { %1441 = vst.msk [vmem:[#allocation2 + $0x10] sm:$0xff] %vm1438_vm14, %v1431_v17 }
 0x45e   :  { %v1271_v4 = vpop.permute.xlu1 %1270  ;;  %v1445_v48 = vld [vmem:[#allocation2 + $0x10] sm:$0xff] }
 0x45f   :  { %1280 = vst.msk [vmem:[#allocation2 + $0x18] sm:$0xff] %vm1276_vm13, %v1271_v4  ;;  %1804 = vmatmul.msk.f32.gmra.mxu1 %vm103_vm1, %v1445_v48 }
 0x460   :  { %1442 = vst.msk [vmem:[#allocation2 + $0x18] sm:$0xff] %vm1438_vm14, %v1433_v38 }
 0x467   :  { %v1446_v30 = vld [vmem:[#allocation2 + $0x18] sm:$0xff] }
 0x468   :  { %1805 = vmatmul.msk.f32.gmra.mxu1 %vm103_vm1, %v1446_v30 }
 0x4c5   :  { %v1484_v42 = vpop.f32.mrf.mxu1 }
 0x4c6   :  { %1807 = vmatmul.msk.f32.vlgmr.msrb.gmra.mxu2 %vm1497_vm0, %v1484_v42 }
 0x4ce   :  { %v1487_v24 = vpop.f32.mrf.mxu1 }
 0x4cf   :  { %1808 = vmatmul.msk.f32.gmra.mxu2 %vm1497_vm0, %v1487_v24 }
 0x4dc   :  { %v1490_v53 = vpop.f32.mrf.mxu1 }
 0x4dd   :  { %1809 = vmatmul.msk.f32.gmra.mxu2 %vm1497_vm0, %v1490_v53 }
 0x4e5   :  { %v1493_v41 = vpop.f32.mrf.mxu1 }
 0x4e6   :  { %1810 = vmatmul.msk.f32.gmra.mxu2 %vm1497_vm0, %v1493_v41  ;;  %1811 = vmatpush.xpose.msk.msra.mxu0 %vm1497_vm0, %v1493_v41 }
 0x4e7   :  { %1680 = vmatpush.msrb.mxu3 %v1493_v41  ;;  %v1956_v41 = vld [vmem:[%s3049_s9] ss:$0 sm:$0xff] }
 0x4e9   :  { %1681 = vmatpush.msrb.mxu3 %v1490_v53 }
 0x4ea   :  { %1812 = vmatpush.xpose.msk.msra.mxu0 %vm1497_vm0, %v1490_v53 }
 0x4eb   :  { %1682 = vmatpush.msrb.mxu3 %v1487_v24 }
 0x4ed   :  { %1683 = vmatpush.msrb.mxu3 %v1484_v42 }
 0x4ee   :  { %1813 = vmatpush.xpose.msk.msra.mxu0 %vm1497_vm0, %v1487_v24 }
 0x4f2   :  { %1814 = vmatpush.xpose.msk.msra.mxu0 %vm1497_vm0, %v1484_v42 }
 0x4f5   :  { %1815 = vmatmul.msk.f32.vlgmr.msra.gmra.mxu0 %vm1497_vm0, %v1543_v52 }
 0x549   :  { %v1531_v2 = vpop.f32.mrf.mxu2 }
 0x54a   :  { %1569 = vperm.xlu0 %1952, %v1531_v2  }
 0x552   :  { %v1534_v33 = vpop.f32.mrf.mxu2 }
 0x553   :  { %1574 = vperm.xlu1 %1953, %v1534_v33  }
 0x560   :  { %v1537_v6 = vpop.f32.mrf.mxu2 }
 0x561   :  { %1579 = vperm.xlu2 %1954, %v1537_v6  }
 0x569   :  { %v1540_v3 = vpop.f32.mrf.mxu2 }
 0x56a   :  { %1584 = vperm.xlu1 %1953, %v1540_v3  }
 0x572   :  { %v1564_v58 = vpop.f32.mrf.mxu0 }
 0x573   :  { %v1587_v50 = vperm.slane %v1564_v58, 0 }
 0x5bb   :  { %v1580_v34 = vpop.permute.xlu2 %1579 }
 0x5bc   :  { %v1590_v32 = vadd.f32 %v1587_v50, %v1580_v34  ;;  %v1570_v19 = vpop.permute.xlu0 %1569 }
 0x5bd   :  { %v1588_v11 = vadd.f32 %v1587_v50, %v1570_v19 }
 0x5be   :  { %vm1594_vm1 = vcmp.gt.f32.partialorder %v1590_v32, 0.0  ;;  %v1598_v40 = vmul.f32 0.2, %v1590_v32 }
 0x5bf   :  { %vm1592_vm2 = vcmp.gt.f32.partialorder %v1588_v11, 0.0  ;;  %v1596_v14 = vmul.f32 0.2, %v1588_v11 }
 0x5c0   :  { %v1602_v12 = vsel %vm1594_vm1, %v1590_v32, %v1598_v40 }
 0x5c1   :  { %v1606_v59 = vadd.f32 %v1602_v12, %v2423_v60  ;;  %v1600_v27 = vsel %vm1592_vm2, %v1588_v11, %v1596_v14 }
 0x5c2   :  { %v1604_v57 = vadd.f32 %v1600_v27, %v2319_v8 }
 0x5c3   :  { %v1614_v22 = vsel %vm211_vm3, %v1606_v59, -inf }
 0x5c4   :  { %1615 = vmax.xlane.f32.xlu1 %v1614_v22  ;;  %v1608_v16 = vsel %vm211_vm3, %v1604_v57, -inf }
 0x5c5   :  { %v1575_v62 = vpop.permute.xlu1 %1574  ;;  %1609 = vmax.xlane.f32.xlu2 %v1608_v16 }
 0x5c6   :  { %v1589_v39 = vadd.f32 %v1587_v50, %v1575_v62 }
 0x5c8   :  { %vm1593_vm4 = vcmp.gt.f32.partialorder %v1589_v39, 0.0  ;;  %v1597_v29 = vmul.f32 0.2, %v1589_v39 }
 0x5ca   :  { %v1601_v55 = vsel %vm1593_vm4, %v1589_v39, %v1597_v29 }
 0x5cb   :  { %v1605_v0 = vadd.f32 %v1601_v55, %v2358_v47 }
 0x5cd   :  { %v1611_v25 = vsel %vm211_vm3, %v1605_v0, -inf }
 0x5ce   :  { %1612 = vmax.xlane.f32.xlu0 %v1611_v25 }
 0x5dc   :  { %v1585_v60 = vpop.permute.xlu1 %1584 }
 0x5dd   :  { %v1591_v35 = vadd.f32 %v1587_v50, %v1585_v60 }
 0x5df   :  { %vm1595_vm5 = vcmp.gt.f32.partialorder %v1591_v35, 0.0  ;;  %v1599_v8 = vmul.f32 0.2, %v1591_v35 }
 0x5e1   :  { %v1603_v37 = vsel %vm1595_vm5, %v1591_v35, %v1599_v8 }
 0x5e2   :  { %v1607_v9 = vadd.f32 %v1603_v37, %v2497_v56 }
 0x5e4   :  { %v1617_v13 = vsel %vm211_vm3, %v1607_v9, -inf }
 0x5e5   :  { %1618 = vmax.xlane.f32.xlu2 %v1617_v13 }
 0x637   :  { %v1616_v28 = vpop.xlane.xlu1 %1615 }
 0x638   :  { %v1622_v51 = vsub.f32 %v1606_v59, %v1616_v28  ;;  %v1610_v23 = vpop.xlane.xlu2 %1609 }
 0x639   :  { %v1620_v5 = vsub.f32 %v1604_v57, %v1610_v23 }
 0x63a   :  { %v1628_v43 = vmul.f32 1.442695, %v1622_v51 }
 0x63b   :  { %v1624_v21 = vmul.f32 1.442695, %v1620_v5 }
 0x63c   :  { %2085 = vpow2.f32 %v1628_v43 }
 0x63d   :  { %2087 = vpow2.f32 %v1624_v21 }
 0x641   :  { %v1613_v47 = vpop.xlane.xlu0 %1612 }
 0x642   :  { %v2086_v18 = vpop.eup %2085  ;;  %v1621_v54 = vsub.f32 %v1605_v0, %v1613_v47 }
 0x643   :  { %v2088_v26 = vpop.eup %2087  ;;  %v1638_v1 = vsel %vm211_vm3, %v2086_v18, 0.0 }
 0x644   :  { %v1626_v31 = vmul.f32 1.442695, %v1621_v54  ;;  %1639 = vadd.xlane.f32.xlu1 %v1638_v1  ;;  %v1632_v56 = vsel %vm211_vm3, %v2088_v26, 0.0 }
 0x645   :  { %1633 = vadd.xlane.f32.xlu0 %v1632_v56 }
 0x646   :  { %2089 = vpow2.f32 %v1626_v31 }
 0x64c   :  { %v2090_v61 = vpop.eup %2089 }
 0x64d   :  { %v1635_v36 = vsel %vm211_vm3, %v2090_v61, 0.0 }
 0x64e   :  { %1636 = vadd.xlane.f32.xlu2 %v1635_v36 }
 0x658   :  { %v1619_v20 = vpop.xlane.xlu2 %1618 }
 0x659   :  { %v1623_v49 = vsub.f32 %v1607_v9, %v1619_v20 }
 0x65b   :  { %v1630_v44 = vmul.f32 1.442695, %v1623_v49 }
 0x65d   :  { %2091 = vpow2.f32 %v1630_v44 }
 0x663   :  { %v2092_v10 = vpop.eup %2091 }
 0x664   :  { %v1641_v7 = vsel %vm211_vm3, %v2092_v10, 0.0 }
 0x665   :  { %1642 = vadd.xlane.f32.xlu0 %v1641_v7 }
 0x6b7   :  { %v1640_v17 = vpop.xlane.xlu1 %1639 }
 0x6b8   :  { %v1634_v45 = vpop.xlane.xlu0 %1633 }
 0x6b9   :  { %2093 = vrcp.f32 %v1634_v45 }
 0x6bf   :  { %v2094_v63 = vpop.eup %2093 }
 0x6c0   :  { %v1648_v15 = vmul.f32 %v2094_v63, %v2088_v26 }
 0x6c1   :  { %v1637_v46 = vpop.xlane.xlu2 %1636 }
 0x6c2   :  { %2095 = vrcp.f32 %v1637_v46  ;;  %1816 = vmatmul.msk.f32.vlgmr.msrb.gmra.mxu3 %vm211_vm3, %v1648_v15 }
 0x6c3   :  { %2097 = vrcp.f32 %v1640_v17 }
 0x6c8   :  { %v2096_v4 = vpop.eup %2095 }
 0x6c9   :  { %v1649_v48 = vmul.f32 %v2096_v4, %v2090_v61  ;;  %v2098_v38 = vpop.eup %2097 }
 0x6ca   :  { %v1650_v30 = vmul.f32 %v2098_v38, %v2086_v18 }
 0x6cb   :  { %1817 = vmatmul.msk.f32.gmra.mxu3 %vm211_vm3, %v1649_v48 }
 0x6d3   :  { %1818 = vmatmul.msk.f32.gmra.mxu3 %vm211_vm3, %v1650_v30 }
 0x6d8   :  { %v1643_v42 = vpop.xlane.xlu0 %1642 }
 0x6d9   :  { %2099 = vrcp.f32 %v1643_v42 }
 0x6df   :  { %v2100_v24 = vpop.eup %2099 }
 0x6e0   :  { %v1651_v53 = vmul.f32 %v2100_v24, %v2092_v10 }
 0x6e2   :  { %1819 = vmatmul.msk.f32.gmra.mxu3 %vm211_vm3, %v1651_v53 }
 0x745   :  { %v1685_v52 = vpop.f32.mrf.mxu3 }
 0x746   :  { %v1686_v2 = vadd.f32 %v1956_v41, %v1685_v52 }
 0x748   :  { %v1697_v33 = vsel %vm1497_vm0, %v1686_v2, -inf }
 0x749   :  { %1698 = vmax.xlane.f32.xlu2 %v1697_v33 }
 0x74e   :  { %v1688_v6 = vpop.f32.mrf.mxu3 }
 0x74f   :  { %v1689_v3 = vadd.f32 %v1956_v41, %v1688_v6 }
 0x751   :  { %v1700_v58 = vsel %vm1497_vm0, %v1689_v3, -inf }
 0x752   :  { %1701 = vmax.xlane.f32.xlu1 %v1700_v58 }
 0x756   :  { %v1691_v50 = vpop.f32.mrf.mxu3 }
 0x757   :  { %v1692_v34 = vadd.f32 %v1956_v41, %v1691_v50 }
 0x759   :  { %v1703_v32 = vsel %vm1497_vm0, %v1692_v34, -inf }
 0x75a   :  { %1704 = vmax.xlane.f32.xlu0 %v1703_v32 }
 0x765   :  { %v1694_v19 = vpop.f32.mrf.mxu3 }
 0x766   :  { %v1695_v11 = vadd.f32 %v1956_v41, %v1694_v19 }
 0x768   :  { %v1706_v40 = vsel %vm1497_vm0, %v1695_v11, -inf }
 0x769   :  { %1707 = vmax.xlane.f32.xlu2 %v1706_v40 }
 0x7bc   :  { %v1699_v14 = vpop.xlane.xlu2 %1698 }
 0x7bd   :  { %v1709_v12 = vsub.f32 %v1686_v2, %v1699_v14 }
 0x7bf   :  { %v1713_v59 = vmul.f32 1.442695, %v1709_v12 }
 0x7c1   :  { %2101 = vpow2.f32 %v1713_v59 }
 0x7c5   :  { %v1702_v27 = vpop.xlane.xlu1 %1701 }
 0x7c6   :  { %v1710_v57 = vsub.f32 %v1689_v3, %v1702_v27 }
 0x7c7   :  { %v2102_v22 = vpop.eup %2101 }
 0x7c8   :  { %v1715_v16 = vmul.f32 1.442695, %v1710_v57  ;;  %v1721_v62 = vsel %vm1497_vm0, %v2102_v22, 0.0 }
 0x7c9   :  { %1722 = vadd.xlane.f32.xlu1 %v1721_v62 }
 0x7ca   :  { %2103 = vpow2.f32 %v1715_v16 }
 0x7cd   :  { %v1705_v39 = vpop.xlane.xlu0 %1704 }
 0x7ce   :  { %v1711_v29 = vsub.f32 %v1692_v34, %v1705_v39 }
 0x7d0   :  { %v2104_v55 = vpop.eup %2103  ;;  %v1717_v0 = vmul.f32 1.442695, %v1711_v29 }
 0x7d1   :  { %v1724_v25 = vsel %vm1497_vm0, %v2104_v55, 0.0 }
 0x7d2   :  { %2105 = vpow2.f32 %v1717_v0  ;;  %1725 = vadd.xlane.f32.xlu0 %v1724_v25 }
 0x7d8   :  { %v2106_v60 = vpop.eup %2105 }
 0x7d9   :  { %v1727_v35 = vsel %vm1497_vm0, %v2106_v60, 0.0 }
 0x7da   :  { %1728 = vadd.xlane.f32.xlu2 %v1727_v35 }
 0x7dc   :  { %v1708_v8 = vpop.xlane.xlu2 %1707 }
 0x7dd   :  { %v1712_v37 = vsub.f32 %v1695_v11, %v1708_v8 }
 0x7df   :  { %v1719_v9 = vmul.f32 1.442695, %v1712_v37 }
 0x7e1   :  { %2107 = vpow2.f32 %v1719_v9 }
 0x7e7   :  { %v2108_v13 = vpop.eup %2107 }
 0x7e8   :  { %v1730_v28 = vsel %vm1497_vm0, %v2108_v13, 0.0 }
 0x7e9   :  { %1731 = vadd.xlane.f32.xlu1 %v1730_v28 }
 0x83c   :  { %v1723_v51 = vpop.xlane.xlu1 %1722 }
 0x83d   :  { %2109 = vlog2.f32 %v1723_v51 }
 0x843   :  { %v2110_v23 = vpop.eup %2109 }
 0x844   :  { %v1734_v5 = vmul.f32 0.6931472, %v2110_v23 }
 0x845   :  { %v1726_v43 = vpop.xlane.xlu0 %1725 }
 0x846   :  { %v1741_v21 = vadd.f32 %v1734_v5, %v1699_v14  ;;  %2111 = vlog2.f32 %v1726_v43 }
 0x848   :  { %v1745_v47 = vsub.f32 %v1686_v2, %v1741_v21 }
 0x84a   :  { %1749 = vst.msk [vmem:[%s3050_s10] sm:$0xff] %vm1497_vm0, %v1745_v47 }
 0x84c   :  { %v2112_v18 = vpop.eup %2111 }
 0x84d   :  { %v1736_v54 = vmul.f32 0.6931472, %v2112_v18  ;;  %v1729_v26 = vpop.xlane.xlu2 %1728 }
 0x84e   :  { %2113 = vlog2.f32 %v1729_v26 }
 0x84f   :  { %v1742_v1 = vadd.f32 %v1736_v54, %v1702_v27 }
 0x851   :  { %v1746_v31 = vsub.f32 %v1689_v3, %v1742_v1 }
 0x853   :  { %1750 = vst.msk [vmem:[%s3050_s10 + $0x8] sm:$0xff] %vm1497_vm0, %v1746_v31 }
 0x854   :  { %v2114_v56 = vpop.eup %2113 }
 0x855   :  { %v1738_v61 = vmul.f32 0.6931472, %v2114_v56 }
 0x857   :  { %v1743_v36 = vadd.f32 %v1738_v61, %v1705_v39 }
 0x859   :  { %v1747_v20 = vsub.f32 %v1692_v34, %v1743_v36 }
 0x85b   :  { %1751 = vst.msk [vmem:[%s3050_s10 + $0x10] sm:$0xff] %vm1497_vm0, %v1747_v20 }
 0x85c   :  { %v1732_v49 = vpop.xlane.xlu1 %1731 }
 0x85d   :  { %2115 = vlog2.f32 %v1732_v49 }
 0x863   :  { %v2116_v44 = vpop.eup %2115 }
 0x864   :  { %v1740_v10 = vmul.f32 0.6931472, %v2116_v44 }
 0x866   :  { %v1744_v7 = vadd.f32 %v1740_v10, %v1708_v8 }
 0x868   :  { %v1748_v45 = vsub.f32 %v1695_v11, %v1744_v7 }
 0x86a   :  { %1752 = vst.msk [vmem:[%s3050_s10 + $0x18] sm:$0xff] %vm1497_vm0, %v1748_v45 }

</bundles_post_ra>
